<compile_context>
chip_gen: v5e
topology: v5e:2x2
jax: 0.10.0
libtpu: 0.0.40
codegen_flags: <defaults>
</compile_context>

<pallas_src>
import functools
import math
import numpy as np
import jax
import jax.numpy as jnp
from jax import lax
from jax.experimental import pallas as pl
from jax.experimental.pallas import tpu as pltpu

# ---------------- small config consistent with the module --------------------
BATCH = 2
C_IN = 4              # backbone.num_channels[0]
H = W = 16
HIDDEN = 32           # transformer.d_model
NUM_GROUPS = 32       # GroupNorm(32, hidden_dim)  -> channels-per-group == 1 here
NUM_CLASSES = 8
NUM_QUERIES = 8
NUM_DEC_LAYERS = 3    # transformer.decoder.num_layers
EPS_INV_SIG = 1e-5
EPS_GN = 1e-5
PAD_W = 128           # lane-dense output width for the head


# =============================================================================
# Fused kernel (single invocation, no grid):
#   input_proj:  y = Wt @ X   with X = (Cin, B*HW) slab; GroupNorm per batch half
#   head:        z = hs @ [Wc_pad | W1] + b ; logits = z[:, :128]
#                h = relu(relu(z[:, 128:]) @ W2 + b2)
#                tmp = h @ W3_pad + b3_pad ; coords = sigmoid(tmp + inv_sigmoid(ref) routed
#                to the first rdim lanes via an iota mask)
# =============================================================================
def _fused_detr_kernel(xs_ref, wt_ref, gn_ref, hs_ref, ref_ref,
                       wcat_ref, bias_ref, w2_ref, w3p_ref,
                       src_ref, logits_ref, coords_ref, *, num_groups):
    # ------------------- input_proj: 1x1 conv + GroupNorm -------------------
    Bn, Cout, HW = src_ref.shape
    cg = Cout // num_groups
    n = float(HW * cg)

    # one MXU push for the whole batch: (Cout, Cin) @ (Cin, B*HW)
    y = jnp.dot(wt_ref[...], xs_ref[...], preferred_element_type=jnp.float32)

    gamma = gn_ref[:, 0:1]                       # (Cout, 1)
    beta = gn_ref[:, 1:2]                        # (Cout, 1)
    if cg > 1:
        # conv bias only matters when a group spans >1 channel; with cg == 1 it is
        # exactly cancelled by the per-channel mean subtraction and is dropped.
        y = y + gn_ref[:, 2:3]

    for bi in range(Bn):                         # tiny static loop, lane-aligned slices
        yb = y[:, bi * HW:(bi + 1) * HW]         # (Cout, HW), lane offset multiple of 128
        s = jnp.sum(yb, axis=1, keepdims=True)
        if cg > 1:
            s = jnp.broadcast_to(
                jnp.sum(s.reshape(num_groups, cg), axis=1, keepdims=True),
                (num_groups, cg)).reshape(Cout, 1)
        mean = s / n
        d = yb - mean
        v = jnp.sum(d * d, axis=1, keepdims=True)      # centered (two-pass) variance
        if cg > 1:
            v = jnp.broadcast_to(
                jnp.sum(v.reshape(num_groups, cg), axis=1, keepdims=True),
                (num_groups, cg)).reshape(Cout, 1)
        inv_std = lax.rsqrt(v / n + EPS_GN)
        src_ref[bi] = d * (inv_std * gamma) + beta

    # --------------------------- detection head -----------------------------
    P = logits_ref.shape[1]                      # 128 (lane-dense slab width)
    D = hs_ref.shape[1]
    x = hs_ref[...]                              # (N, D)

    # fused class head + first bbox-MLP layer (single MXU pass)
    z = jnp.dot(x, wcat_ref[...], preferred_element_type=jnp.float32) + bias_ref[0:1, :]
    logits_ref[...] = z[:, :P]                   # cols >= num_classes are exact zeros

    h = jnp.maximum(z[:, P:], 0.0)                                            # (N, D)
    h = jnp.maximum(jnp.dot(h, w2_ref[...], preferred_element_type=jnp.float32)
                    + bias_ref[1:2, :D], 0.0)
    tmp = jnp.dot(h, w3p_ref[...], preferred_element_type=jnp.float32) + bias_ref[2:3, :P]

    # inverse_sigmoid on the un-padded reference, routed to the first rdim lanes
    r = jnp.clip(ref_ref[...], 0.0, 1.0)
    inv = jnp.log(jnp.maximum(r, EPS_INV_SIG) / jnp.maximum(1.0 - r, EPS_INV_SIG))
    lane = lax.broadcasted_iota(jnp.int32, tmp.shape, 1)
    inv_full = jnp.zeros_like(tmp)
    for c in range(ref_ref.shape[1]):            # rdim is 2 (or 4), static
        inv_full = jnp.where(lane == c,
                             jnp.broadcast_to(inv[:, c:c + 1], tmp.shape),
                             inv_full)
    coords_ref[...] = jax.nn.sigmoid(tmp + inv_full)


# =============================================================================
# One-time parameter preparation (hoisted out of the forward pass)
# =============================================================================
def prepare_detr_params(w_proj, b_proj, gamma, beta, head, num_classes, pad_w=PAD_W):
    """Pads / concatenates / packs weights once; the forward only touches activations."""
    f32 = jnp.float32
    D = head["w1"].shape[0]

    wt = jnp.transpose(w_proj).astype(f32)                                  # (Cout, Cin)
    gn = jnp.stack([gamma, beta, b_proj], axis=1).astype(f32)               # (Cout, 3)

    wc_pad = jnp.zeros((D, pad_w), f32).at[:, :num_classes].set(head["wc"].astype(f32))
    wcat = jnp.concatenate([wc_pad, head["w1"].astype(f32)], axis=1)        # (D, pad_w+D)

    biases = jnp.zeros((3, pad_w + D), f32)
    biases = biases.at[0, :num_classes].set(head["bc"].astype(f32))         # class bias
    biases = biases.at[0, pad_w:].set(head["b1"].astype(f32))               # MLP layer-1 bias
    biases = biases.at[1, :D].set(head["b2"].astype(f32))                   # MLP layer-2 bias
    biases = biases.at[2, :4].set(head["b3"].astype(f32))                   # MLP layer-3 bias

    w3p = jnp.zeros((D, pad_w), f32).at[:, :4].set(head["w3"].astype(f32))
    w2 = head["w2"].astype(f32)

    return dict(wt=wt, gn=gn, wcat=wcat, biases=biases, w2=w2, w3p=w3p)


# =============================================================================
# Forward wrapper (single pallas_call, full-array default BlockSpecs, no grid)
# =============================================================================
@functools.partial(jax.jit, static_argnames=("num_groups", "num_classes"))
def deformable_detr_forward(x_nchw, hs, refs, prep, *, num_groups, num_classes):
    B, Cin, Hh, Ww = x_nchw.shape
    HW = Hh * Ww
    Cout = prep["wt"].shape[0]
    L, Bq, Q, D = hs.shape
    N = L * Bq * Q
    rdim = refs.shape[-1]
    pad_w = prep["w3p"].shape[1]

    # cheap activation reshapes only
    xs = jnp.transpose(x_nchw.reshape(B, Cin, HW), (1, 0, 2)).reshape(Cin, B * HW)
    xs = xs.astype(jnp.float32)
    hs2 = hs.reshape(N, D).astype(jnp.float32)
    r2 = refs.reshape(N, rdim).astype(jnp.float32)

    src, logits_pad, coords_pad = pl.pallas_call(
        functools.partial(_fused_detr_kernel, num_groups=num_groups),
        out_shape=(jax.ShapeDtypeStruct((B, Cout, HW), jnp.float32),
                   jax.ShapeDtypeStruct((N, pad_w), jnp.float32),
                   jax.ShapeDtypeStruct((N, pad_w), jnp.float32)),
    )(xs, prep["wt"], prep["gn"], hs2, r2,
      prep["wcat"], prep["biases"], prep["w2"], prep["w3p"])

    src = src.reshape(B, Cout, Hh, Ww)                       # NCHW, like PyTorch
    logits = logits_pad[:, :num_classes].reshape(L, Bq, Q, num_classes)
    coords = coords_pad[:, :4].reshape(L, Bq, Q, 4)
    return src, logits, coords


# =============================================================================
# Pure-JAX references for correctness checking
# =============================================================================
def _input_proj_ref(x_nchw, w, b, gamma, beta, G):
    Bn, Cin, Hh, Ww = x_nchw.shape
    Cout = w.shape[1]
    y = jnp.einsum('bchw,cd->bdhw', x_nchw, w) + b[None, :, None, None]
    yg = y.reshape(Bn, G, Cout // G, Hh * Ww)
    mean = yg.mean(axis=(2, 3), keepdims=True)
    var = ((yg - mean) ** 2).mean(axis=(2, 3), keepdims=True)
    out = (yg - mean) / jnp.sqrt(var + EPS_GN)
    out = out.reshape(Bn, Cout, Hh, Ww)
    return out * gamma[None, :, None, None] + beta[None, :, None, None]


def _head_ref(hs, refs, p):
    logits = hs @ p["wc"] + p["bc"]
    h = jax.nn.relu(hs @ p["w1"] + p["b1"])
    h = jax.nn.relu(h @ p["w2"] + p["b2"])
    tmp = h @ p["w3"] + p["b3"]
    r = jnp.clip(refs, 0.0, 1.0)
    inv = jnp.log(jnp.maximum(r, EPS_INV_SIG) / jnp.maximum(1.0 - r, EPS_INV_SIG))
    tmp = tmp.at[..., :refs.shape[-1]].add(inv)
    return logits, jax.nn.sigmoid(tmp)


def _xavier_uniform(key, shape, fan_in, fan_out):
    limit = math.sqrt(6.0 / (fan_in + fan_out))
    return jax.random.uniform(key, shape, jnp.float32, -limit, limit)


if __name__ == "__main__":
    key = jax.random.PRNGKey(0)
    ks = jax.random.split(key, 12)

    # ---- stand-in for one backbone feature level (NCHW, like PyTorch) ----
    x_nchw = jax.random.normal(ks[0], (BATCH, C_IN, H, W), jnp.float32)

    # ---- input_proj params: Conv2d(C_IN, HIDDEN, 1) xavier_uniform, bias=0;
    #      GroupNorm(32, HIDDEN) gamma=1, beta=0 ----
    w_proj = _xavier_uniform(ks[1], (C_IN, HIDDEN), C_IN, HIDDEN)
    b_proj = jnp.zeros((HIDDEN,), jnp.float32)
    gamma = jnp.ones((HIDDEN,), jnp.float32)
    beta = jnp.zeros((HIDDEN,), jnp.float32)

    # TODO(synk): deformable transformer not implemented — synthesize hs and
    # reference points deterministically (shapes match transformer outputs).
    hs = jax.random.normal(ks[2], (NUM_DEC_LAYERS, BATCH, NUM_QUERIES, HIDDEN), jnp.float32)
    init_reference = jax.nn.sigmoid(
        jax.random.normal(ks[3], (BATCH, NUM_QUERIES, 2), jnp.float32))
    inter_references = jax.nn.sigmoid(
        jax.random.normal(ks[4], (NUM_DEC_LAYERS - 1, BATCH, NUM_QUERIES, 2), jnp.float32))
    refs = jnp.concatenate([init_reference[None], inter_references], axis=0)  # (L, B, Q, 2)

    # ---- head params (class_embed / bbox_embed shared across levels,
    #      with_box_refine=False): class bias = -log((1-p)/p), last bbox layer
    #      weight = 0, bias = [0, 0, -2, -2] ----
    prior_prob = 0.01
    bias_value = -math.log((1 - prior_prob) / prior_prob)
    head_params = {
        "wc": _xavier_uniform(ks[5], (HIDDEN, NUM_CLASSES), HIDDEN, NUM_CLASSES),
        "bc": jnp.full((NUM_CLASSES,), bias_value, jnp.float32),
        "w1": _xavier_uniform(ks[6], (HIDDEN, HIDDEN), HIDDEN, HIDDEN),
        "b1": 0.01 * jax.random.normal(ks[7], (HIDDEN,), jnp.float32),
        "w2": _xavier_uniform(ks[8], (HIDDEN, HIDDEN), HIDDEN, HIDDEN),
        "b2": 0.01 * jax.random.normal(ks[9], (HIDDEN,), jnp.float32),
        "w3": jnp.zeros((HIDDEN, 4), jnp.float32),
        "b3": jnp.array([0.0, 0.0, -2.0, -2.0], jnp.float32),
    }

    # one-time parameter prep (hoisted out of the forward)
    prep = prepare_detr_params(w_proj, b_proj, gamma, beta, head_params, NUM_CLASSES)
    prep = jax.tree_util.tree_map(jax.block_until_ready, prep)

    src, logits, coords = deformable_detr_forward(
        x_nchw, hs, refs, prep, num_groups=NUM_GROUPS, num_classes=NUM_CLASSES)

    out = {
        "pred_logits": logits[-1],
        "pred_boxes": coords[-1],
        "aux_outputs": [{"pred_logits": a, "pred_boxes": b}
                        for a, b in zip(logits[:-1], coords[:-1])],
    }
    jax.block_until_ready((src, logits, coords))

    # ---- correctness vs pure-JAX references ----
    src_ref = _input_proj_ref(x_nchw, w_proj, b_proj, gamma, beta, NUM_GROUPS)
    logits_ref, coords_ref = _head_ref(hs, refs, head_params)
    np.testing.assert_allclose(np.asarray(src), np.asarray(src_ref), rtol=2e-3, atol=2e-3)
    np.testing.assert_allclose(np.asarray(logits), np.asarray(logits_ref), rtol=2e-3, atol=2e-3)
    np.testing.assert_allclose(np.asarray(coords), np.asarray(coords_ref), rtol=2e-3, atol=2e-3)

    print("KERNEL_OK")
</pallas_src>

<mosaic_0001>
module attributes {stable_mosaic.version = 11 : i64} {
  func.func @_fused_detr_kernel(%arg0: memref<4x512xf32, #tpu.memory_space<vmem>>, %arg1: memref<32x4xf32, #tpu.memory_space<vmem>>, %arg2: memref<32x3xf32, #tpu.memory_space<vmem>>, %arg3: memref<48x32xf32, #tpu.memory_space<vmem>>, %arg4: memref<48x2xf32, #tpu.memory_space<vmem>>, %arg5: memref<32x160xf32, #tpu.memory_space<vmem>>, %arg6: memref<3x160xf32, #tpu.memory_space<vmem>>, %arg7: memref<32x32xf32, #tpu.memory_space<vmem>>, %arg8: memref<32x128xf32, #tpu.memory_space<vmem>>, %arg9: memref<2x32x256xf32, #tpu.memory_space<vmem>>, %arg10: memref<48x128xf32, #tpu.memory_space<vmem>>, %arg11: memref<48x128xf32, #tpu.memory_space<vmem>>) attributes {dimension_semantics = [], scalar_prefetch = 0 : i64, scratch_operands = 0 : i64, tpu.core_type = #tpu.core_type<tc>} {
    %c0 = arith.constant 0 : index
    %c0_0 = arith.constant 0 : index
    %0 = vector.load %arg1[%c0, %c0_0] : memref<32x4xf32, #tpu.memory_space<vmem>>, vector<32x4xf32>
    %c0_1 = arith.constant 0 : index
    %c0_2 = arith.constant 0 : index
    %1 = vector.load %arg0[%c0_1, %c0_2] : memref<4x512xf32, #tpu.memory_space<vmem>>, vector<4x512xf32>
    %cst = arith.constant dense<0.000000e+00> : vector<32x512xf32>
    %2 = tpu.matmul %0, %1, %cst {dimension_numbers = #tpu.dot_dimension_numbers<[1], [0], [0], [1], [0, 0, 1, 1], [], []>} : vector<32x4xf32>, vector<4x512xf32>, vector<32x512xf32> -> vector<32x512xf32>
    %c0_3 = arith.constant 0 : index
    %c0_4 = arith.constant 0 : index
    %3 = vector.load %arg2[%c0_3, %c0_4] : memref<32x3xf32, #tpu.memory_space<vmem>>, vector<32x1xf32>
    %c0_5 = arith.constant 0 : index
    %c1 = arith.constant 1 : index
    %4 = vector.load %arg2[%c0_5, %c1] : memref<32x3xf32, #tpu.memory_space<vmem>>, vector<32x1xf32>
    %5 = vector.extract_strided_slice %2 {offsets = [0, 0], sizes = [32, 256], strides = [1, 1]} : vector<32x512xf32> to vector<32x256xf32>
    %cst_6 = arith.constant dense<0.000000e+00> : vector<32xf32>
    %6 = vector.multi_reduction <add>, %5, %cst_6 [1] : vector<32x256xf32> to vector<32xf32>
    %7 = vector.shape_cast %6 : vector<32xf32> to vector<32x1xf32>
    %cst_7 = arith.constant 2.560000e+02 : f32
    %8 = vector.broadcast %cst_7 : f32 to vector<32x1xf32>
    %9 = arith.divf %7, %8 : vector<32x1xf32>
    %10 = vector.broadcast %9 : vector<32x1xf32> to vector<32x256xf32>
    %11 = arith.subf %5, %10 : vector<32x256xf32>
    %12 = arith.mulf %11, %11 : vector<32x256xf32>
    %cst_8 = arith.constant dense<0.000000e+00> : vector<32xf32>
    %13 = vector.multi_reduction <add>, %12, %cst_8 [1] : vector<32x256xf32> to vector<32xf32>
    %14 = vector.shape_cast %13 : vector<32xf32> to vector<32x1xf32>
    %cst_9 = arith.constant 2.560000e+02 : f32
    %15 = vector.broadcast %cst_9 : f32 to vector<32x1xf32>
    %16 = arith.divf %14, %15 : vector<32x1xf32>
    %cst_10 = arith.constant 9.99999974E-6 : f32
    %17 = vector.broadcast %cst_10 : f32 to vector<32x1xf32>
    %18 = arith.addf %16, %17 : vector<32x1xf32>
    %19 = math.rsqrt %18 : vector<32x1xf32>
    %20 = arith.mulf %19, %3 : vector<32x1xf32>
    %21 = vector.broadcast %20 : vector<32x1xf32> to vector<32x256xf32>
    %22 = arith.mulf %11, %21 : vector<32x256xf32>
    %23 = vector.broadcast %4 : vector<32x1xf32> to vector<32x256xf32>
    %24 = arith.addf %22, %23 : vector<32x256xf32>
    %c0_11 = arith.constant 0 : index
    %c0_12 = arith.constant 0 : index
    %c0_13 = arith.constant 0 : index
    %25 = vector.load %arg9[%c0_11, %c0_12, %c0_13] : memref<2x32x256xf32, #tpu.memory_space<vmem>>, vector<1x32x256xf32>
    %26 = vector.shape_cast %25 : vector<1x32x256xf32> to vector<32x256xf32>
    %27 = vector.shape_cast %24 : vector<32x256xf32> to vector<1x32x256xf32>
    tpu.vector_store %arg9[%c0_11, %c0_12, %c0_13], %27 {strides = array<i32>} : memref<2x32x256xf32, #tpu.memory_space<vmem>>, vector<1x32x256xf32>,
    %28 = vector.extract_strided_slice %2 {offsets = [0, 256], sizes = [32, 256], strides = [1, 1]} : vector<32x512xf32> to vector<32x256xf32>
    %cst_14 = arith.constant dense<0.000000e+00> : vector<32xf32>
    %29 = vector.multi_reduction <add>, %28, %cst_14 [1] : vector<32x256xf32> to vector<32xf32>
    %30 = vector.shape_cast %29 : vector<32xf32> to vector<32x1xf32>
    %cst_15 = arith.constant 2.560000e+02 : f32
    %31 = vector.broadcast %cst_15 : f32 to vector<32x1xf32>
    %32 = arith.divf %30, %31 : vector<32x1xf32>
    %33 = vector.broadcast %32 : vector<32x1xf32> to vector<32x256xf32>
    %34 = arith.subf %28, %33 : vector<32x256xf32>
    %35 = arith.mulf %34, %34 : vector<32x256xf32>
    %cst_16 = arith.constant dense<0.000000e+00> : vector<32xf32>
    %36 = vector.multi_reduction <add>, %35, %cst_16 [1] : vector<32x256xf32> to vector<32xf32>
    %37 = vector.shape_cast %36 : vector<32xf32> to vector<32x1xf32>
    %cst_17 = arith.constant 2.560000e+02 : f32
    %38 = vector.broadcast %cst_17 : f32 to vector<32x1xf32>
    %39 = arith.divf %37, %38 : vector<32x1xf32>
    %cst_18 = arith.constant 9.99999974E-6 : f32
    %40 = vector.broadcast %cst_18 : f32 to vector<32x1xf32>
    %41 = arith.addf %39, %40 : vector<32x1xf32>
    %42 = math.rsqrt %41 : vector<32x1xf32>
    %43 = arith.mulf %42, %3 : vector<32x1xf32>
    %44 = vector.broadcast %43 : vector<32x1xf32> to vector<32x256xf32>
    %45 = arith.mulf %34, %44 : vector<32x256xf32>
    %46 = vector.broadcast %4 : vector<32x1xf32> to vector<32x256xf32>
    %47 = arith.addf %45, %46 : vector<32x256xf32>
    %c1_19 = arith.constant 1 : index
    %c0_20 = arith.constant 0 : index
    %c0_21 = arith.constant 0 : index
    %48 = vector.load %arg9[%c1_19, %c0_20, %c0_21] : memref<2x32x256xf32, #tpu.memory_space<vmem>>, vector<1x32x256xf32>
    %49 = vector.shape_cast %48 : vector<1x32x256xf32> to vector<32x256xf32>
    %50 = vector.shape_cast %47 : vector<32x256xf32> to vector<1x32x256xf32>
    tpu.vector_store %arg9[%c1_19, %c0_20, %c0_21], %50 {strides = array<i32>} : memref<2x32x256xf32, #tpu.memory_space<vmem>>, vector<1x32x256xf32>,
    %c0_22 = arith.constant 0 : index
    %c0_23 = arith.constant 0 : index
    %51 = vector.load %arg3[%c0_22, %c0_23] : memref<48x32xf32, #tpu.memory_space<vmem>>, vector<48x32xf32>
    %c0_24 = arith.constant 0 : index
    %c0_25 = arith.constant 0 : index
    %52 = vector.load %arg5[%c0_24, %c0_25] : memref<32x160xf32, #tpu.memory_space<vmem>>, vector<32x160xf32>
    %cst_26 = arith.constant dense<0.000000e+00> : vector<48x160xf32>
    %53 = tpu.matmul %51, %52, %cst_26 {dimension_numbers = #tpu.dot_dimension_numbers<[1], [0], [0], [1], [0, 0, 1, 1], [], []>} : vector<48x32xf32>, vector<32x160xf32>, vector<48x160xf32> -> vector<48x160xf32>
    %c0_27 = arith.constant 0 : index
    %c0_28 = arith.constant 0 : index
    %54 = vector.load %arg6[%c0_27, %c0_28] : memref<3x160xf32, #tpu.memory_space<vmem>>, vector<1x160xf32>
    %55 = vector.broadcast %54 : vector<1x160xf32> to vector<48x160xf32>
    %56 = arith.addf %53, %55 : vector<48x160xf32>
    %57 = vector.extract_strided_slice %56 {offsets = [0, 0], sizes = [48, 128], strides = [1, 1]} : vector<48x160xf32> to vector<48x128xf32>
    %c0_29 = arith.constant 0 : index
    %c0_30 = arith.constant 0 : index
    %58 = vector.load %arg10[%c0_29, %c0_30] : memref<48x128xf32, #tpu.memory_space<vmem>>, vector<48x128xf32>
    tpu.vector_store %arg10[%c0_29, %c0_30], %57 {strides = array<i32>} : memref<48x128xf32, #tpu.memory_space<vmem>>, vector<48x128xf32>,
    %59 = vector.extract_strided_slice %56 {offsets = [0, 128], sizes = [48, 32], strides = [1, 1]} : vector<48x160xf32> to vector<48x32xf32>
    %cst_31 = arith.constant 0.000000e+00 : f32
    %60 = vector.broadcast %cst_31 : f32 to vector<48x32xf32>
    %61 = arith.maximumf %59, %60 : vector<48x32xf32>
    %c0_32 = arith.constant 0 : index
    %c0_33 = arith.constant 0 : index
    %62 = vector.load %arg7[%c0_32, %c0_33] : memref<32x32xf32, #tpu.memory_space<vmem>>, vector<32x32xf32>
    %cst_34 = arith.constant dense<0.000000e+00> : vector<48x32xf32>
    %63 = tpu.matmul %61, %62, %cst_34 {dimension_numbers = #tpu.dot_dimension_numbers<[1], [0], [0], [1], [0, 0, 1, 1], [], []>} : vector<48x32xf32>, vector<32x32xf32>, vector<48x32xf32> -> vector<48x32xf32>
    %c1_35 = arith.constant 1 : index
    %c0_36 = arith.constant 0 : index
    %64 = vector.load %arg6[%c1_35, %c0_36] : memref<3x160xf32, #tpu.memory_space<vmem>>, vector<1x32xf32>
    %65 = vector.broadcast %64 : vector<1x32xf32> to vector<48x32xf32>
    %66 = arith.addf %63, %65 : vector<48x32xf32>
    %cst_37 = arith.constant 0.000000e+00 : f32
    %67 = vector.broadcast %cst_37 : f32 to vector<48x32xf32>
    %68 = arith.maximumf %66, %67 : vector<48x32xf32>
    %c0_38 = arith.constant 0 : index
    %c0_39 = arith.constant 0 : index
    %69 = vector.load %arg8[%c0_38, %c0_39] : memref<32x128xf32, #tpu.memory_space<vmem>>, vector<32x128xf32>
    %cst_40 = arith.constant dense<0.000000e+00> : vector<48x128xf32>
    %70 = tpu.matmul %68, %69, %cst_40 {dimension_numbers = #tpu.dot_dimension_numbers<[1], [0], [0], [1], [0, 0, 1, 1], [], []>} : vector<48x32xf32>, vector<32x128xf32>, vector<48x128xf32> -> vector<48x128xf32>
    %c2 = arith.constant 2 : index
    %c0_41 = arith.constant 0 : index
    %71 = vector.load %arg6[%c2, %c0_41] : memref<3x160xf32, #tpu.memory_space<vmem>>, vector<1x128xf32>
    %72 = vector.broadcast %71 : vector<1x128xf32> to vector<48x128xf32>
    %73 = arith.addf %70, %72 : vector<48x128xf32>
    %c0_42 = arith.constant 0 : index
    %c0_43 = arith.constant 0 : index
    %74 = vector.load %arg4[%c0_42, %c0_43] : memref<48x2xf32, #tpu.memory_space<vmem>>, vector<48x2xf32>
    %cst_44 = arith.constant 0.000000e+00 : f32
    %cst_45 = arith.constant 1.000000e+00 : f32
    %75 = vector.broadcast %cst_44 : f32 to vector<48x2xf32>
    %76 = arith.maximumf %75, %74 : vector<48x2xf32>
    %77 = vector.broadcast %cst_45 : f32 to vector<48x2xf32>
    %78 = arith.minimumf %77, %76 : vector<48x2xf32>
    %cst_46 = arith.constant 9.99999974E-6 : f32
    %79 = vector.broadcast %cst_46 : f32 to vector<48x2xf32>
    %80 = arith.maximumf %78, %79 : vector<48x2xf32>
    %cst_47 = arith.constant 1.000000e+00 : f32
    %81 = vector.broadcast %cst_47 : f32 to vector<48x2xf32>
    %82 = arith.subf %81, %78 : vector<48x2xf32>
    %cst_48 = arith.constant 9.99999974E-6 : f32
    %83 = vector.broadcast %cst_48 : f32 to vector<48x2xf32>
    %84 = arith.maximumf %82, %83 : vector<48x2xf32>
    %85 = arith.divf %80, %84 : vector<48x2xf32>
    %86 = math.log %85 : vector<48x2xf32>
    %87 = tpu.iota {dimensions = array<i32: 1>} : vector<48x128xi32>
    %cst_49 = arith.constant 0.000000e+00 : f32
    %88 = vector.broadcast %cst_49 : f32 to vector<48x128xf32>
    %c0_i32 = arith.constant 0 : i32
    %89 = vector.broadcast %c0_i32 : i32 to vector<48x128xi32>
    %90 = arith.cmpi eq, %87, %89 : vector<48x128xi32>
    %91 = vector.extract_strided_slice %86 {offsets = [0, 0], sizes = [48, 1], strides = [1, 1]} : vector<48x2xf32> to vector<48x1xf32>
    %92 = vector.shape_cast %91 : vector<48x1xf32> to vector<48x1xf32>
    %93 = vector.broadcast %92 : vector<48x1xf32> to vector<48x128xf32>
    %94 = arith.select %90, %93, %88 : vector<48x128xi1>, vector<48x128xf32>
    %c1_i32 = arith.constant 1 : i32
    %95 = vector.broadcast %c1_i32 : i32 to vector<48x128xi32>
    %96 = arith.cmpi eq, %87, %95 : vector<48x128xi32>
    %97 = vector.extract_strided_slice %86 {offsets = [0, 1], sizes = [48, 1], strides = [1, 1]} : vector<48x2xf32> to vector<48x1xf32>
    %98 = vector.shape_cast %97 : vector<48x1xf32> to vector<48x1xf32>
    %99 = vector.broadcast %98 : vector<48x1xf32> to vector<48x128xf32>
    %100 = arith.select %96, %99, %94 : vector<48x128xi1>, vector<48x128xf32>
    %101 = arith.addf %73, %100 : vector<48x128xf32>
    %102 = arith.negf %101 : vector<48x128xf32>
    %103 = math.exp %102 : vector<48x128xf32>
    %cst_50 = arith.constant 1.000000e+00 : f32
    %104 = vector.broadcast %cst_50 : f32 to vector<48x128xf32>
    %105 = arith.addf %104, %103 : vector<48x128xf32>
    %106 = arith.divf %104, %105 : vector<48x128xf32>
    %c0_51 = arith.constant 0 : index
    %c0_52 = arith.constant 0 : index
    %107 = vector.load %arg11[%c0_51, %c0_52] : memref<48x128xf32, #tpu.memory_space<vmem>>, vector<48x128xf32>
    tpu.vector_store %arg11[%c0_51, %c0_52], %106 {strides = array<i32>} : memref<48x128xf32, #tpu.memory_space<vmem>>, vector<48x128xf32>,
    return
  }
}

</mosaic_0001>

<bundles_post_ra>
// kernel: deformable_detr_forward.1
= control target key start
LH: loop header
LB: loop body
LE: loop exit
PB: predicated region body
PF: predicated region fallthrough
CT: control target
= control target key end

     0   :  { %s2103_s0 = inlined_call_operand.vmem [shape: f32[4,512], index: 0, kind: input, shape index: {}]   ;;  %s2104_s1 = inlined_call_operand.vmem [shape: f32[32,4], index: 1, kind: input, shape index: {}]   ;;  %s2105_s2 = inlined_call_operand.vmem [shape: f32[32,3], index: 2, kind: input, shape index: {}]   ;;  %s2106_s3 = inlined_call_operand.vmem [shape: f32[48,32], index: 3, kind: input, shape index: {}]   ;;  %s2107_s4 = inlined_call_operand.vmem [shape: f32[48,2], index: 4, kind: input, shape index: {}]   ;;  %s2108_s5 = inlined_call_operand.vmem [shape: f32[32,160], index: 5, kind: input, shape index: {}]   ;;  %s2109_s6 = inlined_call_operand.vmem [shape: f32[3,160], index: 6, kind: input, shape index: {}]   ;;  %s2110_s7 = inlined_call_operand.vmem [shape: f32[32,32], index: 7, kind: input, shape index: {}]   ;;  %s2111_s8 = inlined_call_operand.vmem [shape: f32[32,128], index: 8, kind: input, shape index: {}]   ;;  %s2112_s9 = inlined_call_operand.vmem [shape: f32[2,32,256], index: 9, kind: output, shape index: {0}]   ;;  %s2113_s10 = inlined_call_operand.hbm [shape: f32[48,128], index: 10, kind: output, shape index: {1}]   ;;  %s2114_s11 = inlined_call_operand.vmem [shape: f32[48,128], index: 11, kind: output, shape index: {2}]  }
   0x1   :  { %v40_v0 = vld [vmem:[%s2103_s0] sm:$0xff]  ;;  %v41_v1 = vld [vmem:[%s2103_s0 + $0x8] sm:$0xff] }
   0x2   :  { %44 = vst [vmem:[#allocation1] ss:$2 sm:$0xff] %v40_v0 }
   0x3   :  { %46 = vst [vmem:[#allocation1 + $0x10] ss:$2 sm:$0xff] %v41_v1 }
   0x4   :  { %17 = vsyncpa [#allocation3], 0  ;;  %vm64_vm0 = vcmask 1043456   ;;  %v36_v2 = vld [vmem:[%s2104_s1] sm:$0xff]  ;;  %vm51_vm1 = vcmask 31744   ;;  %v514_v7 = vld [vmem:[%s2108_s5 + $0x38] sm:$0xff] }
   0x5   :  { %v512_v8 = vld [vmem:[%s2108_s5 + $0x28] sm:$0xff]  ;;  %v510_v9 = vld [vmem:[%s2108_s5 + $0x18] sm:$0xff]  ;;  %v38_v12 = vld [vmem:[%s2104_s1 + $0x10] sm:$0xff]  ;;  %vm521_vm2 = vcmask 261120   ;;  %v2115_v18 = vmov 1   ;;  %s1088_s22 = sshll.u32 %s2113_s10, 4  ;;  %s1089_s22 = int_to_ptr.hbm [resolvable:$true] %s1088_s22 }
   0x6   :  { %v37_v10 = vld [vmem:[%s2104_s1 + $0x8] sm:$0xff]  ;;  %v39_v13 = vld [vmem:[%s2104_s1 + $0x18] sm:$0xff]  ;;  %v1391_v14 = vld [vmem:[%s2106_s3] sm:$0xff]  ;;  %1170 = vset.pattern.permute.xlu2 %v2115_v18  ;;  %1171 = vset.pattern.permute.xlu1 %v2115_v18  ;;  %s1280_s23 = smov 128   ;;  %s1281_s24 = smov 8  }
   0x7   :  { %v508_v11 = vld [vmem:[%s2108_s5 + $0x8] sm:$0xff]  ;;  %v1405_v16 = vld [vmem:[%s2105_s2] sm:$0xff]  ;;  %v1419_v19 = vld [vmem:[%s2106_s3 + $0x10] sm:$0xff] }
   0x8   :  { %v1398_v15 = vld [vmem:[%s2106_s3 + $0x8] sm:$0xff]  ;;  %326 = vperm.xlu2 %1170, %v1405_v16   ;;  %v1426_v20 = vld [vmem:[%s2106_s3 + $0x18] sm:$0xff]  ;;  %v1433_v21 = vld [vmem:[%s2106_s3 + $0x20] sm:$0xff] }
   0x9   :  { %v47_v3 = vld.sshfl [vmem:[#allocation1] sm:$0xff pattern:$0x75316420]  ;;  %v48_v4 = vld.sshfl [vmem:[#allocation1 + $0x8] sm:$0xff pattern:$0x75316420] }
   0xa   :  { %1106 = vmatpush.msk.msra.mxu0 %vm64_vm0, %v47_v3  ;;  %1111 = vmatpush.msk.msra.mxu1 %vm64_vm0, %v48_v4  ;;  %v49_v5 = vld.sshfl [vmem:[#allocation1 + $0x10] sm:$0xff pattern:$0x75316420]  ;;  %v50_v6 = vld.sshfl [vmem:[#allocation1 + $0x18] sm:$0xff pattern:$0x75316420] }
   0xb   :  { %1116 = vmatpush.msk.msra.mxu2 %vm64_vm0, %v49_v5  ;;  %1121 = vmatpush.msk.msra.mxu3 %vm64_vm0, %v50_v6  ;;  %v1410_v17 = vld [vmem:[%s2105_s2 + $0x8] sm:$0xff]  ;;  %v746_v25 = vld [vmem:[%s2107_s4] sm:$0xff]  ;;  %v748_v28 = vld [vmem:[%s2107_s4 + $0x10] sm:$0xff] }
   0xc   :  { %1107 = vmatmul.msk.f32.vlgmr.msra.gmra.mxu0 %vm51_vm1, %v36_v2  ;;  %1112 = vmatmul.msk.f32.vlgmr.msra.gmra.mxu1 %vm51_vm1, %v36_v2  ;;  %v1440_v22 = vld [vmem:[%s2106_s3 + $0x28] sm:$0xff]  ;;  %v752_v27 = vmax.f32 %v746_v25, 0.0  ;;  %v754_v31 = vmax.f32 %v748_v28, 0.0  ;;  %v749_v32 = vld [vmem:[%s2107_s4 + $0x18] sm:$0xff]  ;;  %v750_v38 = vld [vmem:[%s2107_s4 + $0x20] sm:$0xff] }
   0xd   :  { %1117 = vmatmul.msk.f32.vlgmr.msra.gmra.mxu2 %vm51_vm1, %v36_v2  ;;  %1122 = vmatmul.msk.f32.vlgmr.msra.gmra.mxu3 %vm51_vm1, %v36_v2  ;;  %v747_v23 = vld [vmem:[%s2107_s4 + $0x8] sm:$0xff]  ;;  %v755_v36 = vmax.f32 %v749_v32, 0.0  ;;  %v625_v39 = vld [vmem:[%s2110_s7 + $0x18] sm:$0xff]  ;;  %v756_v42 = vmax.f32 %v750_v38, 0.0  ;;  %v624_v51 = vld [vmem:[%s2110_s7 + $0x10] sm:$0xff] }
   0xe   :  { %587 = vmatpush.msrb.mxu1 %v514_v7  ;;  %331 = vperm.xlu1 %1171, %v1410_v17   ;;  %v753_v24 = vmax.f32 %v747_v23, 0.0  ;;  %v1456_v30 = vmin.f32 %v752_v27, 1.0  ;;  %v1464_v35 = vmin.f32 %v754_v31, 1.0  ;;  %v751_v43 = vld [vmem:[%s2107_s4 + $0x28] sm:$0xff]  ;;  %v622_v58 = vld [vmem:[%s2110_s7] sm:$0xff] }
   0xf   :  { %v1476_v41 = vmin.f32 %v755_v36, 1.0  ;;  %658 = vmatpush.msrb.mxu2 %v625_v39  ;;  %v757_v47 = vmax.f32 %v751_v43, 0.0  ;;  %v1487_v48 = vmin.f32 %v756_v42, 1.0  ;;  %v623_v55 = vld [vmem:[%s2110_s7 + $0x8] sm:$0xff] }
  0x10   :  { %588 = vmatpush.msrb.mxu1 %v512_v8  ;;  %v1450_v26 = vmin.f32 %v753_v24, 1.0  ;;  %v770_v34 = vsub.f32 1.0, %v1456_v30  ;;  %v772_v40 = vsub.f32 1.0, %v1464_v35 }
  0x11   :  { %v773_v46 = vsub.f32 1.0, %v1476_v41  ;;  %659 = vmatpush.msrb.mxu2 %v624_v51  ;;  %v1508_v57 = vmin.f32 %v757_v47, 1.0  ;;  %v774_v59 = vsub.f32 1.0, %v1487_v48 }
  0x12   :  { %589 = vmatpush.msrb.mxu1 %v510_v9  ;;  %v771_v29 = vsub.f32 1.0, %v1450_v26  ;;  %v1467_v37 = vmax.f32 %v770_v34, 1e-05  ;;  %v1484_v45 = vmax.f32 %v772_v40, 1e-05  ;;  %v1277_v9 = vmov 0  }
  0x13   :  { %v1506_v56 = vmax.f32 %v773_v46, 1e-05  ;;  %660 = vmatpush.msrb.mxu2 %v623_v55  ;;  %v775_v62 = vsub.f32 1.0, %v1508_v57  ;;  %v1522_v1 = vmax.f32 %v774_v59, 1e-05  ;;  %1172 = vset.pattern.permute.xlu0 %v1277_v9 }
  0x14   :  { %1108 = vmatmul.msk.f32.gmra.mxu0 %vm51_vm1, %v37_v10  ;;  %1113 = vmatmul.msk.f32.gmra.mxu1 %vm51_vm1, %v37_v10  ;;  %v1461_v33 = vmax.f32 %v771_v29, 1e-05  ;;  %vm787_vm6 = vweird.f32 %v1467_v37  ;;  %v793_v43 = vand.u32 2147483648, %v1467_v37  ;;  %v791_v47 = vand.u32 2147483647, %v1467_v37 }
  0x15   :  { %1118 = vmatmul.msk.f32.gmra.mxu2 %vm51_vm1, %v37_v10  ;;  %1123 = vmatmul.msk.f32.gmra.mxu3 %vm51_vm1, %v37_v10  ;;  %v1536_v10 = vmax.f32 %v775_v62, 1e-05  ;;  %v765_v55 = vmax.f32 %v1450_v26, 1e-05  ;;  %vm817_vm10 = vweird.f32 %v1484_v45  ;;  %v823_v26 = vand.u32 2147483648, %v1484_v45 }
  0x16   :  { %590 = vmatpush.msrb.mxu1 %v508_v11  ;;  %1182 = vrcp.f32 %v1461_v33  ;;  %661 = vmatpush.msrb.mxu2 %v622_v58  ;;  %vm802_vm3 = vweird.f32 %v1461_v33  ;;  %v806_v24 = vand.u32 2147483647, %v1461_v33  ;;  %vm792_vm12 = vcmp.eq.f32.partialorder %v791_v47, 8.507059e+37 }
  0x17   :  { %1184 = vrcp.f32 %v1467_v37  ;;  %vm832_vm14 = vweird.f32 %v1506_v56 }
  0x18   :  { %1186 = vrcp.f32 %v1484_v45  ;;  %vm807_vm8 = vcmp.eq.f32.partialorder %v806_v24, 8.507059e+37  ;;  %v866_v24 = vand.u32 2147483647, %v1536_v10 }
  0x19   :  { %1188 = vrcp.f32 %v1506_v56 }
  0x1a   :  { %1190 = vrcp.f32 %v1522_v1 }
  0x1b   :  { %1192 = vrcp.f32 %v1536_v10 }
  0x1c   :  { %1114 = vmatmul.msk.f32.gmra.mxu1 %vm51_vm1, %v38_v12  ;;  %1109 = vmatmul.msk.f32.gmra.mxu0 %vm51_vm1, %v38_v12  ;;  %v1482_v44 = vpop.eup %1182 }
  0x1d   :  { %1119 = vmatmul.msk.f32.gmra.mxu2 %vm51_vm1, %v38_v12  ;;  %1124 = vmatmul.msk.f32.gmra.mxu3 %vm51_vm1, %v38_v12  ;;  %v798_v53 = vmul.f32 %v1482_v44, %v1461_v33  ;;  %v1500_v54 = vpop.eup %1184  ;;  %vm803_vm4 = vweird.f32 %v1482_v44 }
  0x1e   :  { %v783_v61 = vmul.f32 %v1500_v54, %v1467_v37  ;;  %v1524_v2 = vpop.eup %1186  ;;  %vm1549_vm5 = vmor %vm802_vm3, %vm803_vm4  ;;  %vm788_vm7 = vweird.f32 %v1500_v54  ;;  %vm847_vm3 = vweird.f32 %v1522_v1 }
  0x1f   :  { %v799_v60 = vsub.f32 1.0, %v798_v53  ;;  %v813_v11 = vmul.f32 %v1524_v2, %v1484_v45  ;;  %v1543_v12 = vpop.eup %1188  ;;  %vm1575_vm9 = vmor %vm787_vm6, %vm788_vm7  ;;  %vm818_vm11 = vweird.f32 %v1524_v2  ;;  %vm862_vm7 = vweird.f32 %v1536_v10 }
  0x20   :  { %v784_v8 = vsub.f32 1.0, %v783_v61  ;;  %v828_v32 = vmul.f32 %v1543_v12, %v1506_v56  ;;  %v1566_v38 = vpop.eup %1190  ;;  %v821_v61 = vand.u32 2147483647, %v1484_v45  ;;  %vm1610_vm13 = vmor %vm817_vm10, %vm818_vm11  ;;  %vm833_vm15 = vweird.f32 %v1543_v12 }
  0x21   :  { %v800_v7 = vmul.f32 %v1482_v44, %v799_v60  ;;  %v814_v31 = vsub.f32 1.0, %v813_v11  ;;  %v1581_v53 = vpop.eup %1192  ;;  %v843_v58 = vmul.f32 %v1566_v38, %v1522_v1  ;;  %v794_v60 = vor.u32 1.1754944e-38, %v793_v43 }
  0x22   :  { %v785_v25 = vmul.f32 %v1500_v54, %v784_v8  ;;  %vm822_vm0 = vcmp.eq.f32.partialorder %v821_v61, 8.507059e+37  ;;  %v824_v45 = vor.u32 1.1754944e-38, %v823_v26  ;;  %vm848_vm4 = vweird.f32 %v1566_v38 }
  0x23   :  { %v801_v23 = vadd.f32 %v1482_v44, %v800_v7  ;;  %v815_v51 = vmul.f32 %v1524_v2, %v814_v31  ;;  %v858_v7 = vmul.f32 %v1581_v53, %v1536_v10  ;;  %v838_v31 = vand.u32 2147483648, %v1506_v56  ;;  %vm1653_vm6 = vmor %vm847_vm3, %vm848_vm4 }
  0x24   :  { %1115 = vmatmul.msk.f32.gmra.mxu1 %vm51_vm1, %v39_v13  ;;  %1110 = vmatmul.msk.f32.gmra.mxu0 %vm51_vm1, %v39_v13  ;;  %v786_v42 = vadd.f32 %v1500_v54, %v785_v25  ;;  %v844_v25 = vsub.f32 1.0, %v843_v58  ;;  %v851_v61 = vand.u32 2147483647, %v1522_v1  ;;  %vm867_vm11 = vcmp.eq.f32.partialorder %v866_v24, 8.507059e+37 }
  0x25   :  { %1120 = vmatmul.msk.f32.gmra.mxu2 %vm51_vm1, %v39_v13  ;;  %1125 = vmatmul.msk.f32.gmra.mxu3 %vm51_vm1, %v39_v13  ;;  %v808_v13 = vand.u32 2147483648, %v1461_v33  ;;  %v805_v40 = vsel %vm1549_vm5, %v1482_v44, %v801_v23  ;;  %v764_v23 = vmax.f32 %v1456_v30, 1e-05  ;;  %v515_v30 = vld [vmem:[%s2109_s6] ss:$4 sm:$0x3]  ;;  %vm1627_vm1 = vmor %vm832_vm14, %vm833_vm15 }
  0x26   :  { %v790_v59 = vsel %vm1575_vm9, %v1500_v54, %v786_v42  ;;  %v859_v42 = vsub.f32 1.0, %v858_v7  ;;  %v845_v47 = vmul.f32 %v1566_v38, %v844_v25  ;;  %vm852_vm9 = vcmp.eq.f32.partialorder %v851_v61, 8.507059e+37 }
  0x27   :  { %v809_v36 = vor.u32 1.1754944e-38, %v808_v13  ;;  %v795_v27 = vsel %vm792_vm12, %v794_v60, %v790_v59 }
  0x28   :  { %v796_v43 = vmul.f32 %v795_v27, %v764_v23  ;;  %v860_v59 = vmul.f32 %v1581_v53, %v859_v42 }
  0x29   :  { %v810_v44 = vsel %vm807_vm8, %v809_v36, %v805_v40  ;;  %v836_v40 = vand.u32 2147483647, %v1506_v56  ;;  %v1642_v56 = vld [vmem:[%s2105_s2 + $0x18] sm:$0xff]  ;;  %vm863_vm8 = vweird.f32 %v1581_v53 }
  0x2a   :  { %v811_v13 = vmul.f32 %v810_v44, %v765_v55  ;;  %v839_v55 = vor.u32 1.1754944e-38, %v838_v31  ;;  %vm1666_vm10 = vmor %vm862_vm7, %vm863_vm8 }
  0x2b   :  { %vm837_vm5 = vcmp.eq.f32.partialorder %v836_v40, 8.507059e+37 }
  0x2c   :  { %1140 = vmatmul.msk.f32.vlgmr.msrb.gmra.mxu1 %vm521_vm2, %v1391_v14  ;;  %1194 = vlog2.f32 %v811_v13 }
  0x2d   :  { %1196 = vlog2.f32 %v796_v43  ;;  %v769_v43 = vmax.f32 %v1508_v57, 1e-05 }
  0x34   :  { %1141 = vmatmul.msk.f32.gmra.mxu1 %vm521_vm2, %v1398_v15 }
  0x3c   :  { %1142 = vmatmul.msk.f32.gmra.mxu1 %vm521_vm2, %v1419_v19 }
  0x44   :  { %1143 = vmatmul.msk.f32.gmra.mxu1 %vm521_vm2, %v1426_v20 }
  0x4c   :  { %1144 = vmatmul.msk.f32.gmra.mxu1 %vm521_vm2, %v1433_v21 }
  0x54   :  { %1145 = vmatmul.msk.f32.gmra.mxu1 %vm521_vm2, %v1440_v22 }
  0x89   :  { %v1489_v49 = vpop.f32.mrf.mxu0  ;;  %v1491_v50 = vpop.f32.mrf.mxu1 }
  0x8a   :  { %v193_v52 = vadd.f32 %v1491_v50, %v1489_v49 }
  0x8c   :  { %194 = vadd.xlane.f32.xlu0 %v193_v52  ;;  %v829_v52 = vsub.f32 1.0, %v828_v32 }
  0x8e   :  { %v830_v54 = vmul.f32 %v1543_v12, %v829_v52  ;;  %v766_v52 = vmax.f32 %v1464_v35, 1e-05  ;;  %v853_v35 = vand.u32 2147483648, %v1522_v1  ;;  %v1195_v1 = vpop.eup %1194 }
  0x90   :  { %v1518_v63 = vpop.f32.mrf.mxu2  ;;  %v1520_v0 = vpop.f32.mrf.mxu3  ;;  %v831_v36 = vadd.f32 %v1543_v12, %v830_v54  ;;  %v854_v23 = vor.u32 1.1754944e-38, %v853_v35 }
  0x91   :  { %v1526_v3 = vpop.f32.mrf.mxu0  ;;  %v1528_v4 = vpop.f32.mrf.mxu1  ;;  %v360_v5 = vadd.f32 %v1520_v0, %v1518_v63 }
  0x92   :  { %v196_v6 = vadd.f32 %v1528_v4, %v1526_v3  ;;  %v835_v58 = vsel %vm1627_vm1, %v1543_v12, %v831_v36  ;;  %v875_v36 = vmul.f32 0.6931472, %v1195_v1 }
  0x93   :  { %361 = vadd.xlane.f32.xlu2 %v360_v5  ;;  %v840_v7 = vsel %vm837_vm5, %v839_v55, %v835_v58 }
  0x94   :  { %197 = vadd.xlane.f32.xlu0 %v196_v6  ;;  %v816_v6 = vadd.f32 %v1524_v2, %v815_v51  ;;  %v1632_v51 = vperm.slane %v515_v30, 1  ;;  %v1197_v30 = vpop.eup %1196 }
  0x95   :  { %v873_v46 = vmul.f32 0.6931472, %v1197_v30  ;;  %v1278_v30 = vmov 256.0  }
  0x98   :  { %v1554_v28 = vpop.f32.mrf.mxu2  ;;  %v1556_v29 = vpop.f32.mrf.mxu3 }
  0x99   :  { %v1562_v33 = vpop.f32.mrf.mxu1  ;;  %v363_v34 = vadd.f32 %v1556_v29, %v1554_v28  ;;  %v1568_v39 = vpop.f32.mrf.mxu0 }
  0x9a   :  { %v199_v37 = vadd.f32 %v1562_v33, %v1568_v39 }
  0x9b   :  { %364 = vadd.xlane.f32.xlu1 %v363_v34  ;;  %v820_v34 = vsel %vm1610_vm13, %v1524_v2, %v816_v6  ;;  %v767_v6 = vmax.f32 %v1476_v41, 1e-05  ;;  %v861_v41 = vadd.f32 %v1581_v53, %v860_v59 }
  0x9c   :  { %v825_v44 = vsel %vm822_vm0, %v824_v45, %v820_v34  ;;  %v768_v45 = vmax.f32 %v1487_v48, 1e-05 }
  0x9d   :  { %v826_v12 = vmul.f32 %v825_v44, %v766_v52  ;;  %v841_v31 = vmul.f32 %v840_v7, %v767_v6  ;;  %v1692_v6 = vld [vmem:[%s2105_s2 + $0x10] sm:$0xff] }
  0x9f   :  { %1198 = vlog2.f32 %v826_v12 }
  0xa0   :  { %v1595_v62 = vpop.f32.mrf.mxu2  ;;  %v1597_v5 = vpop.f32.mrf.mxu3  ;;  %1200 = vlog2.f32 %v841_v31 }
  0xa1   :  { %v1603_v8 = vpop.f32.mrf.mxu1  ;;  %v366_v11 = vadd.f32 %v1597_v5, %v1595_v62  ;;  %v1620_v32 = vpop.f32.mrf.mxu0 }
  0xa2   :  { %v202_v2 = vadd.f32 %v1603_v8, %v1620_v32 }
  0xa3   :  { %367 = vadd.xlane.f32.xlu0 %v366_v11  ;;  %200 = vadd.xlane.f32.xlu1 %v199_v37  ;;  %v846_v37 = vadd.f32 %v1566_v38, %v845_v47  ;;  %v868_v11 = vand.u32 2147483648, %v1536_v10  ;;  %v865_v10 = vsel %vm1666_vm10, %v1581_v53, %v861_v41 }
  0xa5   :  { %v850_v25 = vsel %vm1653_vm6, %v1566_v38, %v846_v37  ;;  %v869_v34 = vor.u32 1.1754944e-38, %v868_v11  ;;  %v1199_v55 = vpop.eup %1198 }
  0xa6   :  { %v855_v40 = vsel %vm852_vm9, %v854_v23, %v850_v25  ;;  %v1201_v53 = vpop.eup %1200  ;;  %v1679_v44 = vmul.f32 0.6931472, %v1199_v55 }
  0xa7   :  { %v856_v47 = vmul.f32 %v855_v40, %v768_v45  ;;  %v870_v52 = vsel %vm867_vm11, %v869_v34, %v865_v10  ;;  %v1682_v57 = vmul.f32 0.6931472, %v1201_v53 }
  0xa8   :  { %v1707_v25 = vpop.f32.mrf.mxu2  ;;  %v1709_v27 = vpop.f32.mrf.mxu3 }
  0xa9   :  { %v592_v60 = vpop.f32.mrf.mxu1  ;;  %1202 = vlog2.f32 %v856_v47  ;;  %v369_v31 = vadd.f32 %v1709_v27, %v1707_v25 }
  0xaa   :  { %v593_v26 = vadd.f32 %v592_v60, %v1632_v51 }
  0xab   :  { %341 = vperm.xlu2 %1170, %v1642_v56   ;;  %203 = vadd.xlane.f32.xlu1 %v202_v2  ;;  %v871_v2 = vmul.f32 %v870_v52, %v769_v43 }
  0xac   :  { %v616_v13 = vmax.f32 %v593_v26, 0.0 }
  0xad   :  { %1204 = vlog2.f32 %v871_v2 }
  0xae   :  { %1146 = vmatmul.msk.f32.vlgmr.msrb.gmra.mxu2 %vm521_vm2, %v616_v13  ;;  %1206 = vrcp.f32 %v1278_v30 }
  0xaf   :  { %v1203_v60 = vpop.eup %1202 }
  0xb0   :  { %v1687_v61 = vmul.f32 0.6931472, %v1203_v60 }
  0xb1   :  { %v595_v38 = vpop.f32.mrf.mxu1 }
  0xb2   :  { %v596_v42 = vadd.f32 %v595_v38, %v1632_v51  ;;  %v1715_v38 = vpop.permute.xlu1 %331 }
  0xb3   :  { %1173 = vset.pattern.permute.xlu2 %v1277_v9  ;;  %v1205_v37 = vpop.eup %1204 }
  0xb4   :  { %v617_v48 = vmax.f32 %v596_v42, 0.0  ;;  %894 = vperm.xlu2 %1173, %v875_v36   ;;  %v1695_v12 = vmul.f32 0.6931472, %v1205_v37  ;;  %v1207_v45 = vpop.eup %1206  ;;  %v689_v37 = vld [vmem:[%s2111_s8 + $0x10] sm:$0xff] }
  0xb5   :  { %v206_v34 = vmul.f32 256.0, %v1207_v45  ;;  %vm210_vm12 = vweird.f32 %v1207_v45 }
  0xb6   :  { %1147 = vmatmul.msk.f32.gmra.mxu2 %vm521_vm2, %v617_v48 }
  0xb7   :  { %889 = vperm.xlu0 %1172, %v873_v46   ;;  %v207_v40 = vsub.f32 1.0, %v206_v34 }
  0xb9   :  { %v598_v58 = vpop.f32.mrf.mxu1  ;;  %v208_v10 = vmul.f32 %v1207_v45, %v207_v40 }
  0xba   :  { %v599_v35 = vadd.f32 %v598_v58, %v1632_v51 }
  0xbc   :  { %v618_v59 = vmax.f32 %v599_v35, 0.0  ;;  %899 = vperm.xlu2 %1173, %v1679_v44  }
  0xbe   :  { %1148 = vmatmul.msk.f32.gmra.mxu2 %vm521_vm2, %v618_v59 }
  0xbf   :  { %904 = vperm.xlu0 %1172, %v1682_v57  }
  0xc1   :  { %v601_v26 = vpop.f32.mrf.mxu1 }
  0xc2   :  { %v602_v54 = vadd.f32 %v601_v26, %v1632_v51 }
  0xc4   :  { %v619_v7 = vmax.f32 %v602_v54, 0.0  ;;  %909 = vperm.xlu2 %1173, %v1687_v61   ;;  %336 = vperm.xlu1 %1171, %v1692_v6  }
  0xc6   :  { %1149 = vmatmul.msk.f32.gmra.mxu2 %vm521_vm2, %v619_v7  ;;  %v688_v7 = vld [vmem:[%s2111_s8 + $0x8] sm:$0xff] }
  0xc7   :  { %914 = vperm.xlu0 %1172, %v1695_v12  }
  0xc9   :  { %v604_v11 = vpop.f32.mrf.mxu1 }
  0xca   :  { %v605_v1 = vadd.f32 %v604_v11, %v1632_v51 }
  0xcc   :  { %v620_v13 = vmax.f32 %v605_v1, 0.0  ;;  %1174 = vset.pattern.permute.xlu2 %v2115_v18 }
  0xce   :  { %1150 = vmatmul.msk.f32.gmra.mxu2 %vm521_vm2, %v620_v13 }
  0xcf   :  { %1175 = vset.pattern.permute.xlu0 %v2115_v18 }
  0xd0   :  { %929 = vperm.xlu0 %1175, %v875_v36   ;;  %v1713_v36 = vpop.permute.xlu2 %326 }
  0xd1   :  { %v607_v23 = vpop.f32.mrf.mxu1 }
  0xd2   :  { %v608_v41 = vadd.f32 %v607_v23, %v1632_v51  ;;  %v209_v51 = vadd.f32 %v1207_v45, %v208_v10 }
  0xd4   :  { %v621_v24 = vmax.f32 %v608_v41, 0.0  ;;  %v1717_v43 = vsel %vm210_vm12, %v1207_v45, %v209_v51 }
  0xd6   :  { %1151 = vmatmul.msk.f32.gmra.mxu2 %vm521_vm2, %v621_v24 }
  0xed   :  { %370 = vadd.xlane.f32.xlu2 %v369_v31 }
  0xff   :  { %v195_v42 = vpop.xlane.xlu0 %194 }
 0x105   :  { %925 = vperm.xlu2 %1174, %v873_v46   ;;  %v690_v46 = vld [vmem:[%s2111_s8 + $0x18] sm:$0xff] }
 0x106   :  { %v362_v47 = vpop.xlane.xlu2 %361  ;;  %723 = vmatpush.msrb.mxu3 %v690_v46 }
 0x107   :  { %v372_v52 = vmul.f32 %v362_v47, %v1717_v43  ;;  %v198_v59 = vpop.xlane.xlu0 %197 }
 0x108   :  { %724 = vmatpush.msrb.mxu3 %v689_v37 }
 0x109   :  { %v1721_v48 = vsub.f32 %v1518_v63, %v372_v52  ;;  %v1724_v55 = vsub.f32 %v1520_v0, %v372_v52 }
 0x10a   :  { %725 = vmatpush.msrb.mxu3 %v688_v7 }
 0x10b   :  { %v384_v2 = vmul.f32 %v1721_v48, %v1721_v48  ;;  %v385_v53 = vmul.f32 %v1724_v55, %v1724_v55 }
 0x10d   :  { %v392_v58 = vadd.f32 %v385_v53, %v384_v2 }
 0x10e   :  { %v365_v35 = vpop.xlane.xlu1 %364 }
 0x10f   :  { %v373_v60 = vmul.f32 %v365_v35, %v1717_v43  ;;  %393 = vadd.xlane.f32.xlu0 %v392_v58  ;;  %v213_v58 = vmul.f32 %v1717_v43, %v198_v59  ;;  %v1180_v59 = vld [vmem:[%s2109_s6 + $0x1] ss:$0 sm:$0xff] }
 0x111   :  { %v1735_v63 = vsub.f32 %v1554_v28, %v373_v60  ;;  %v1738_v0 = vsub.f32 %v1556_v29, %v373_v60  ;;  %v687_v28 = vld [vmem:[%s2111_s8] sm:$0xff]  ;;  %v1801_v46 = vsub.f32 %v1526_v3, %v213_v58  ;;  %v1804_v60 = vsub.f32 %v1528_v4, %v213_v58  ;;  %v1815_v4 = vpop.permute.xlu2 %341  ;;  %s1279_s8 = smov [#allocation2]  }
 0x112   :  { %726 = vmatpush.msrb.mxu3 %v687_v28  ;;  %s1086_s1 = sshll.u32 %s1279_s8, 4  ;;  %s1087_s1 = int_to_ptr.vmem [resolvable:$true] %s1086_s1 }
 0x113   :  { %v386_v26 = vmul.f32 %v1735_v63, %v1735_v63  ;;  %v387_v54 = vmul.f32 %v1738_v0, %v1738_v0 }
 0x115   :  { %v395_v29 = vadd.f32 %v387_v54, %v386_v26  ;;  %v226_v26 = vmul.f32 %v1801_v46, %v1801_v46  ;;  %v227_v54 = vmul.f32 %v1804_v60, %v1804_v60 }
 0x116   :  { %v368_v11 = vpop.xlane.xlu0 %367  ;;  %v201_v1 = vpop.xlane.xlu1 %200 }
 0x117   :  { %396 = vadd.xlane.f32.xlu0 %v395_v29  ;;  %v214_v13 = vmul.f32 %v1717_v43, %v201_v1  ;;  %v374_v23 = vmul.f32 %v368_v11, %v1717_v43  ;;  %v235_v11 = vadd.f32 %v227_v54, %v226_v26  ;;  %v884_v1 = vlaneseq }
 0x119   :  { %v1756_v41 = vsub.f32 %v1568_v39, %v214_v13  ;;  %v1759_v24 = vsub.f32 %v1562_v33, %v214_v13  ;;  %v1766_v45 = vsub.f32 %v1595_v62, %v374_v23  ;;  %v1769_v34 = vsub.f32 %v1597_v5, %v374_v23 }
 0x11a   :  { %v212_v39 = vmul.f32 %v1717_v43, %v195_v42 }
 0x11b   :  { %v228_v31 = vmul.f32 %v1756_v41, %v1756_v41  ;;  %v229_v30 = vmul.f32 %v1759_v24, %v1759_v24  ;;  %v388_v62 = vmul.f32 %v1766_v45, %v1766_v45  ;;  %v389_v5 = vmul.f32 %v1769_v34, %v1769_v34 }
 0x11c   :  { %v1784_v52 = vsub.f32 %v1489_v49, %v212_v39  ;;  %v1787_v42 = vsub.f32 %v1491_v50, %v212_v39 }
 0x11d   :  { %v238_v40 = vadd.f32 %v229_v30, %v228_v31  ;;  %v1820_v30 = vand.u32 127, %v884_v1 }
 0x11e   :  { %v204_v10 = vpop.xlane.xlu1 %203  ;;  %v224_v35 = vmul.f32 %v1784_v52, %v1784_v52  ;;  %v225_v49 = vmul.f32 %v1787_v42, %v1787_v42 }
 0x11f   :  { %v215_v51 = vmul.f32 %v1717_v43, %v204_v10  ;;  %239 = vadd.xlane.f32.xlu0 %v238_v40  ;;  %vm886_vm13 = vcmp.eq.s32.totalorder %v1820_v30, 0  ;;  %v895_v10 = vpop.permute.xlu2 %894  ;;  %vm923_vm14 = vcmp.eq.s32.totalorder %v1820_v30, 1 }
 0x120   :  { %v232_v37 = vadd.f32 %v225_v49, %v224_v35 }
 0x121   :  { %v1774_v33 = vsub.f32 %v1620_v32, %v215_v51  ;;  %v1777_v47 = vsub.f32 %v1603_v8, %v215_v51  ;;  %v398_v8 = vadd.f32 %v389_v5, %v388_v62  ;;  %v918_v51 = vsel %vm886_vm13, %v895_v10, 0.0 }
 0x123   :  { %v230_v2 = vmul.f32 %v1774_v33, %v1774_v33  ;;  %v231_v32 = vmul.f32 %v1777_v47, %v1777_v47 }
 0x125   :  { %v241_v53 = vadd.f32 %v231_v32, %v230_v2 }
 0x127   :  { %399 = vadd.xlane.f32.xlu0 %v398_v8  ;;  %242 = vadd.xlane.f32.xlu1 %v241_v53  ;;  %v1834_v58 = vpop.permute.xlu2 %899 }
 0x129   :  { %v1798_v50 = vpop.permute.xlu0 %889 }
 0x12e   :  { %233 = vadd.xlane.f32.xlu2 %v232_v37 }
 0x12f   :  { %v1840_v26 = vpop.permute.xlu2 %909 }
 0x131   :  { %v663_v7 = vpop.f32.mrf.mxu2  ;;  %v1813_v28 = vpop.permute.xlu0 %904 }
 0x132   :  { %v664_v3 = vadd.f32 %v1180_v59, %v663_v7 }
 0x134   :  { %v681_v29 = vmax.f32 %v664_v3, 0.0 }
 0x136   :  { %236 = vadd.xlane.f32.xlu2 %v235_v11  ;;  %1152 = vmatmul.msk.f32.vlgmr.msrb.gmra.mxu3 %vm521_vm2, %v681_v29 }
 0x139   :  { %v666_v13 = vpop.f32.mrf.mxu2  ;;  %v1818_v23 = vpop.permute.xlu0 %914 }
 0x13a   :  { %v667_v31 = vadd.f32 %v1180_v59, %v666_v13 }
 0x13b   :  { %945 = vperm.xlu0 %1175, %v1695_v12  }
 0x13c   :  { %v682_v40 = vmax.f32 %v667_v31, 0.0 }
 0x13e   :  { %1153 = vmatmul.msk.f32.gmra.mxu3 %vm521_vm2, %v682_v40 }
 0x141   :  { %v669_v39 = vpop.f32.mrf.mxu2 }
 0x142   :  { %v670_v62 = vadd.f32 %v1180_v59, %v669_v39  ;;  %v930_v5 = vpop.permute.xlu0 %929  ;;  %v1861_v39 = vpop.permute.xlu1 %336 }
 0x143   :  { %v1830_v2 = vsel %vm923_vm14, %v930_v5, %v918_v51  ;;  %1177 = vset.pattern.permute.xlu0 %v1277_v9 }
 0x144   :  { %v683_v32 = vmax.f32 %v670_v62, 0.0 }
 0x146   :  { %1154 = vmatmul.msk.f32.gmra.mxu3 %vm521_vm2, %v683_v32  ;;  %v509_v32 = vld [vmem:[%s2108_s5 + $0x10] sm:$0xff] }
 0x149   :  { %v672_v12 = vpop.f32.mrf.mxu2 }
 0x14a   :  { %v673_v8 = vadd.f32 %v1180_v59, %v672_v12 }
 0x14c   :  { %v684_v53 = vmax.f32 %v673_v8, 0.0 }
 0x14e   :  { %937 = vperm.xlu2 %1174, %v1682_v57   ;;  %1155 = vmatmul.msk.f32.gmra.mxu3 %vm521_vm2, %v684_v53 }
 0x151   :  { %v675_v35 = vpop.f32.mrf.mxu2 }
 0x152   :  { %v676_v49 = vadd.f32 %v1180_v59, %v675_v35 }
 0x154   :  { %v685_v37 = vmax.f32 %v676_v49, 0.0 }
 0x156   :  { %941 = vperm.xlu2 %1174, %v1687_v61   ;;  %1156 = vmatmul.msk.f32.gmra.mxu3 %vm521_vm2, %v685_v37 }
 0x159   :  { %v678_v54 = vpop.f32.mrf.mxu2 }
 0x15a   :  { %v679_v7 = vadd.f32 %v1180_v59, %v678_v54 }
 0x15c   :  { %v686_v3 = vmax.f32 %v679_v7, 0.0 }
 0x15e   :  { %1157 = vmatmul.msk.f32.gmra.mxu3 %vm521_vm2, %v686_v3  ;;  %1176 = vset.pattern.permute.xlu2 %v1277_v9 }
 0x160   :  { %v371_v29 = vpop.xlane.xlu2 %370 }
 0x161   :  { %v375_v57 = vmul.f32 %v371_v29, %v1717_v43 }
 0x163   :  { %v1846_v11 = vsub.f32 %v1707_v25, %v375_v57  ;;  %v1849_v1 = vsub.f32 %v1709_v27, %v375_v57  ;;  %v513_v25 = vld [vmem:[%s2108_s5 + $0x30] sm:$0xff] }
 0x164   :  { %552 = vmatpush.msrb.mxu0 %v513_v25 }
 0x165   :  { %v390_v61 = vmul.f32 %v1846_v11, %v1846_v11  ;;  %v391_v59 = vmul.f32 %v1849_v1, %v1849_v1 }
 0x167   :  { %v401_v13 = vadd.f32 %v391_v59, %v390_v61  ;;  %v507_v61 = vld [vmem:[%s2108_s5] sm:$0xff] }
 0x168   :  { %v1864_v5 = vpop.permute.xlu2 %925 }
 0x169   :  { %402 = vadd.xlane.f32.xlu1 %v401_v13 }
 0x182   :  { %v394_v31 = vpop.xlane.xlu0 %393  ;;  %933 = vperm.xlu1 %1171, %v1679_v44  }
 0x183   :  { %v404_v62 = vmul.f32 %v394_v31, %v1717_v43 }
 0x185   :  { %v1866_v44 = vadd.f32 1e-05, %v404_v62 }
 0x187   :  { %vm418_vm7 = vweird.f32 %v1866_v44 }
 0x18a   :  { %v397_v40 = vpop.xlane.xlu0 %396  ;;  %1178 = vset.pattern.permute.xlu1 %v1277_v9  ;;  %v511_v9 = vld [vmem:[%s2108_s5 + $0x20] sm:$0xff] }
 0x18b   :  { %553 = vmatpush.msrb.mxu0 %v511_v9  ;;  %v405_v25 = vmul.f32 %v397_v40, %v1717_v43 }
 0x18d   :  { %554 = vmatpush.msrb.mxu0 %v509_v32 }
 0x18f   :  { %555 = vmatpush.msrb.mxu0 %v507_v61 }
 0x190   :  { %1134 = vmatmul.msk.f32.vlgmr.msrb.gmra.mxu0 %vm521_vm2, %v1391_v14  ;;  %v1896_v14 = vadd.f32 1e-05, %v405_v25 }
 0x192   :  { %v240_v10 = vpop.xlane.xlu0 %239 }
 0x193   :  { %v246_v27 = vmul.f32 %v240_v10, %v1717_v43 }
 0x195   :  { %v250_v51 = vadd.f32 1e-05, %v246_v27 }
 0x197   :  { %1208 = vrsqrt.f32 %v250_v51  ;;  %vm278_vm0 = vweird.f32 %v250_v51 }
 0x198   :  { %1210 = vrsqrt.f32 %v1866_v44  ;;  %1135 = vmatmul.msk.f32.gmra.mxu0 %vm521_vm2, %v1398_v15 }
 0x19a   :  { %v400_v12 = vpop.xlane.xlu0 %399  ;;  %v243_v8 = vpop.xlane.xlu1 %242 }
 0x19b   :  { %v406_v49 = vmul.f32 %v400_v12, %v1717_v43  ;;  %v247_v37 = vmul.f32 %v243_v8, %v1717_v43 }
 0x19d   :  { %v1209_v53 = vpop.eup %1208  ;;  %v1878_v57 = vadd.f32 1e-05, %v406_v49  ;;  %v1883_v59 = vadd.f32 1e-05, %v247_v37 }
 0x19e   :  { %v273_v35 = vmul.f32 %v1209_v53, %v250_v51  ;;  %v1885_v31 = vpop.eup %1210  ;;  %vm279_vm15 = vweird.f32 %v1209_v53 }
 0x19f   :  { %v413_v62 = vmul.f32 %v1885_v31, %v1866_v44  ;;  %vm280_vm1 = vmor %vm278_vm0, %vm279_vm15  ;;  %vm419_vm6 = vweird.f32 %v1885_v31  ;;  %vm438_vm0 = vweird.f32 %v1878_v57 }
 0x1a0   :  { %v274_v54 = vmul.f32 %v1209_v53, %v273_v35  ;;  %1136 = vmatmul.msk.f32.gmra.mxu0 %vm521_vm2, %v1419_v19  ;;  %vm1934_vm8 = vmor %vm418_vm7, %vm419_vm6  ;;  %vm428_vm6 = vweird.f32 %v1896_v14 }
 0x1a1   :  { %v234_v7 = vpop.xlane.xlu2 %233  ;;  %v414_v40 = vmul.f32 %v1885_v31, %v413_v62 }
 0x1a2   :  { %v244_v3 = vmul.f32 %v234_v7, %v1717_v43  ;;  %v275_v29 = vmul.f32 0.5, %v274_v54 }
 0x1a3   :  { %v415_v7 = vmul.f32 0.5, %v414_v40 }
 0x1a4   :  { %v248_v13 = vadd.f32 1e-05, %v244_v3  ;;  %v276_v10 = vsub.f32 1.5, %v275_v29 }
 0x1a6   :  { %1212 = vrsqrt.f32 %v248_v13  ;;  %v277_v27 = vmul.f32 %v1209_v53, %v276_v10  ;;  %vm258_vm4 = vweird.f32 %v248_v13 }
 0x1a7   :  { %1214 = vrsqrt.f32 %v1878_v57 }
 0x1a8   :  { %1216 = vrsqrt.f32 %v1883_v59  ;;  %v281_v32 = vsel %vm280_vm1, %v1209_v53, %v277_v27  ;;  %v416_v27 = vsub.f32 1.5, %v415_v7  ;;  %1137 = vmatmul.msk.f32.gmra.mxu0 %vm521_vm2, %v1426_v20 }
 0x1a9   :  { %v237_v9 = vpop.xlane.xlu2 %236  ;;  %v294_v8 = vmul.f32 %v281_v32, %v1692_v6 }
 0x1aa   :  { %v245_v12 = vmul.f32 %v237_v9, %v1717_v43  ;;  %v417_v19 = vmul.f32 %v1885_v31, %v416_v27 }
 0x1ab   :  { %308 = vperm.xlu1 %1178, %v294_v8   ;;  %v1919_v8 = vld [vmem:[%s2109_s6 + $0x2] ss:$0 sm:$0xff] }
 0x1ac   :  { %v1213_v35 = vpop.eup %1212  ;;  %v249_v51 = vadd.f32 1e-05, %v245_v12  ;;  %v421_v44 = vsel %vm1934_vm8, %v1885_v31, %v417_v19 }
 0x1ad   :  { %v1899_v49 = vpop.eup %1214  ;;  %v253_v37 = vmul.f32 %v1213_v35, %v248_v13  ;;  %vm259_vm3 = vweird.f32 %v1213_v35  ;;  %v917_v13 = vsel %vm886_vm13, %v1798_v50, 0.0 }
 0x1ae   :  { %v1903_v54 = vpop.eup %1216  ;;  %1218 = vrsqrt.f32 %v249_v51  ;;  %v433_v3 = vmul.f32 %v1899_v49, %v1878_v57  ;;  %vm260_vm5 = vmor %vm258_vm4, %vm259_vm3  ;;  %v948_v50 = vsel %vm923_vm14, %v1864_v5, %v917_v13  ;;  %vm268_vm10 = vweird.f32 %v249_v51 }
 0x1af   :  { %1220 = vrsqrt.f32 %v1896_v14  ;;  %v254_v53 = vmul.f32 %v1213_v35, %v253_v37  ;;  %v283_v29 = vmul.f32 %v1903_v54, %v1883_v59  ;;  %vm439_vm12 = vweird.f32 %v1899_v49 }
 0x1b0   :  { %v434_v62 = vmul.f32 %v1899_v49, %v433_v3  ;;  %vm289_vm15 = vweird.f32 %v1903_v54  ;;  %vm440_vm1 = vmor %vm438_vm0, %vm439_vm12  ;;  %vm288_vm3 = vweird.f32 %v1883_v59  ;;  %1138 = vmatmul.msk.f32.gmra.mxu0 %vm521_vm2, %v1433_v21 }
 0x1b1   :  { %v255_v61 = vmul.f32 0.5, %v254_v53  ;;  %v284_v9 = vmul.f32 %v1903_v54, %v283_v29  ;;  %vm290_vm4 = vmor %vm288_vm3, %vm289_vm15 }
 0x1b2   :  { %v435_v3 = vmul.f32 0.5, %v434_v62 }
 0x1b3   :  { %v256_v10 = vsub.f32 1.5, %v255_v61  ;;  %v285_v29 = vmul.f32 0.5, %v284_v9 }
 0x1b4   :  { %v1219_v25 = vpop.eup %1218  ;;  %v436_v9 = vsub.f32 1.5, %v435_v3 }
 0x1b5   :  { %v1910_v15 = vpop.eup %1220  ;;  %v263_v32 = vmul.f32 %v1219_v25, %v249_v51  ;;  %v257_v12 = vmul.f32 %v1213_v35, %v256_v10  ;;  %vm269_vm9 = vweird.f32 %v1219_v25 }
 0x1b6   :  { %v423_v53 = vmul.f32 %v1910_v15, %v1896_v14  ;;  %vm270_vm11 = vmor %vm268_vm10, %vm269_vm9  ;;  %v437_v51 = vmul.f32 %v1899_v49, %v436_v9  ;;  %v920_v14 = vsel %vm886_vm13, %v1813_v28, 0.0 }
 0x1b7   :  { %v264_v40 = vmul.f32 %v1219_v25, %v263_v32  ;;  %v261_v37 = vsel %vm260_vm5, %v1213_v35, %v257_v12  ;;  %v286_v12 = vsub.f32 1.5, %v285_v29  ;;  %vm429_vm5 = vweird.f32 %v1910_v15 }
 0x1b8   :  { %v292_v7 = vmul.f32 %v261_v37, %v1405_v16  ;;  %v424_v27 = vmul.f32 %v1910_v15, %v423_v53  ;;  %v452_v37 = vmul.f32 %v421_v44, %v1405_v16  ;;  %vm430_vm7 = vmor %vm428_vm6, %vm429_vm5  ;;  %1139 = vmatmul.msk.f32.gmra.mxu0 %vm521_vm2, %v1440_v22  ;;  %v2130_v22 = vmov 1  }
 0x1b9   :  { %v265_v61 = vmul.f32 0.5, %v264_v40  ;;  %v728_v10 = vpop.f32.mrf.mxu3 }
 0x1ba   :  { %v729_v18 = vadd.f32 %v1919_v8, %v728_v10  ;;  %298 = vperm.xlu2 %1176, %v292_v7   ;;  %v425_v53 = vmul.f32 0.5, %v424_v27  ;;  %v287_v7 = vmul.f32 %v1903_v54, %v286_v12 }
 0x1bb   :  { %v266_v32 = vsub.f32 1.5, %v265_v61 }
 0x1bc   :  { %v954_v62 = vadd.f32 %v948_v50, %v729_v18  ;;  %v291_v19 = vsel %vm290_vm4, %v1903_v54, %v287_v7 }
 0x1bd   :  { %v267_v40 = vmul.f32 %v1219_v25, %v266_v32  ;;  %v295_v10 = vmul.f32 %v291_v19, %v1642_v56  ;;  %v1248_v32 = vld [vmem:[%s2105_s2 + $0x8] sm:$0xff] }
 0x1be   :  { %v1158_v5 = vmul.f32 -1.442695, %v954_v62 }
 0x1bf   :  { %v271_v13 = vsel %vm270_vm11, %v1219_v25, %v267_v40  ;;  %v441_v25 = vsel %vm440_vm1, %v1899_v49, %v437_v51  ;;  %v938_v49 = vpop.permute.xlu2 %937 }
 0x1c0   :  { %1222 = vpow2.f32 %v1158_v5  ;;  %v293_v18 = vmul.f32 %v271_v13, %v1410_v17  ;;  %v426_v17 = vsub.f32 1.5, %v425_v53  ;;  %v454_v61 = vmul.f32 %v441_v25, %v1692_v6 }
 0x1c1   :  { %v731_v31 = vpop.f32.mrf.mxu3  ;;  %v951_v9 = vsel %vm923_vm14, %v938_v49, %v920_v14 }
 0x1c2   :  { %v732_v20 = vadd.f32 %v1919_v8, %v731_v31  ;;  %458 = vperm.xlu2 %1176, %v452_v37   ;;  %303 = vperm.xlu0 %1177, %v293_v18   ;;  %v427_v59 = vmul.f32 %v1910_v15, %v426_v17  ;;  %v921_v17 = vsel %vm886_vm13, %v1840_v26, 0.0 }
 0x1c4   :  { %v955_v16 = vadd.f32 %v1830_v2, %v732_v20  ;;  %v431_v21 = vsel %vm430_vm7, %v1910_v15, %v427_v59 }
 0x1c5   :  { %v453_v27 = vmul.f32 %v1248_v32, %v431_v21 }
 0x1c6   :  { %v1223_v3 = vpop.eup %1222  ;;  %v1159_v57 = vmul.f32 -1.442695, %v955_v16 }
 0x1c7   :  { %v978_v29 = vadd.f32 1.0, %v1223_v3  ;;  %v942_v31 = vpop.permute.xlu2 %941 }
 0x1c8   :  { %1224 = vpow2.f32 %v1159_v57  ;;  %v952_v3 = vsel %vm923_vm14, %v942_v31, %v921_v17 }
 0x1c9   :  { %1226 = vrcp.f32 %v978_v29  ;;  %v1961_v2 = vpop.f32.mrf.mxu3  ;;  %v995_v12 = vand.u32 2147483648, %v978_v29  ;;  %v993_v5 = vand.u32 2147483647, %v978_v29  ;;  %vm989_vm8 = vweird.f32 %v978_v29 }
 0x1ca   :  { %468 = vperm.xlu0 %1177, %v454_v61   ;;  %313 = vperm.xlu2 %1176, %v295_v10  }
 0x1cb   :  { %v996_v28 = vor.u32 1.1754944e-38, %v995_v12  ;;  %vm994_vm10 = vcmp.eq.f32.partialorder %v993_v5, 8.507059e+37 }
 0x1ce   :  { %v1225_v6 = vpop.eup %1224 }
 0x1cf   :  { %v1227_v54 = vpop.eup %1226  ;;  %v979_v50 = vadd.f32 1.0, %v1225_v6 }
 0x1d0   :  { %v985_v35 = vmul.f32 %v1227_v54, %v978_v29  ;;  %vm990_vm2 = vweird.f32 %v1227_v54 }
 0x1d1   :  { %1228 = vrcp.f32 %v979_v50  ;;  %v737_v62 = vpop.f32.mrf.mxu3  ;;  %vm991_vm9 = vmor %vm989_vm8, %vm990_vm2  ;;  %v1010_v57 = vand.u32 2147483648, %v979_v50  ;;  %v1008_v61 = vand.u32 2147483647, %v979_v50  ;;  %vm1004_vm12 = vweird.f32 %v979_v50 }
 0x1d2   :  { %v986_v15 = vsub.f32 1.0, %v985_v35  ;;  %v738_v44 = vadd.f32 %v1919_v8, %v737_v62  ;;  %463 = vperm.xlu2 %1176, %v453_v27   ;;  %1179 = vset.pattern.permute.xlu0 %v2130_v22  ;;  %v946_v27 = vpop.permute.xlu0 %945 }
 0x1d3   :  { %vm1009_vm0 = vcmp.eq.f32.partialorder %v1008_v61, 8.507059e+37 }
 0x1d4   :  { %v987_v40 = vmul.f32 %v1227_v54, %v986_v15  ;;  %v957_v13 = vadd.f32 %v951_v9, %v738_v44  ;;  %v922_v44 = vsel %vm886_vm13, %v1818_v23, 0.0 }
 0x1d6   :  { %v988_v37 = vadd.f32 %v1227_v54, %v987_v40  ;;  %v1161_v18 = vmul.f32 -1.442695, %v957_v13 }
 0x1d7   :  { %v1229_v53 = vpop.eup %1228 }
 0x1d8   :  { %v992_v51 = vsel %vm991_vm9, %v1227_v54, %v988_v37  ;;  %v1000_v7 = vmul.f32 %v1229_v53, %v979_v50  ;;  %1230 = vpow2.f32 %v1161_v18  ;;  %vm1005_vm11 = vweird.f32 %v1229_v53 }
 0x1d9   :  { %v997_v20 = vsel %vm994_vm10, %v996_v28, %v992_v51  ;;  %v740_v16 = vpop.f32.mrf.mxu3  ;;  %vm1006_vm15 = vmor %vm1004_vm12, %vm1005_vm11  ;;  %v1011_v54 = vor.u32 1.1754944e-38, %v1010_v57  ;;  %v953_v50 = vsel %vm923_vm14, %v946_v27, %v922_v44 }
 0x1da   :  { %1074 = vst [vmem:[%s2114_s11] sm:$0xff] %v997_v20  ;;  %v1001_v25 = vsub.f32 1.0, %v1000_v7  ;;  %v741_v19 = vadd.f32 %v1919_v8, %v740_v16 }
 0x1dc   :  { %v1002_v29 = vmul.f32 %v1229_v53, %v1001_v25  ;;  %v958_v10 = vadd.f32 %v952_v3, %v741_v19  ;;  %v403_v59 = vpop.xlane.xlu1 %402 }
 0x1dd   :  { %v407_v21 = vmul.f32 %v403_v59, %v1717_v43 }
 0x1de   :  { %v1231_v6 = vpop.eup %1230  ;;  %v1003_v26 = vadd.f32 %v1229_v53, %v1002_v29  ;;  %v1162_v49 = vmul.f32 -1.442695, %v958_v10  ;;  %v735_v10 = vadd.f32 %v1919_v8, %v1961_v2 }
 0x1df   :  { %v981_v35 = vadd.f32 1.0, %v1231_v6  ;;  %v411_v32 = vadd.f32 1e-05, %v407_v21  ;;  %v919_v6 = vsel %vm886_vm13, %v1834_v58, 0.0 }
 0x1e0   :  { %v1007_v62 = vsel %vm1006_vm15, %v1229_v53, %v1003_v26  ;;  %1232 = vpow2.f32 %v1162_v49 }
 0x1e1   :  { %v1012_v14 = vsel %vm1009_vm0, %v1011_v54, %v1007_v62  ;;  %1234 = vrcp.f32 %v981_v35  ;;  %v743_v15 = vpop.f32.mrf.mxu3  ;;  %v1038_v53 = vand.u32 2147483647, %v981_v35  ;;  %v1040_v28 = vand.u32 2147483648, %v981_v35 }
 0x1e2   :  { %1075 = vst [vmem:[%s2114_s11 + $0x8] sm:$0xff] %v1012_v14  ;;  %1236 = vrsqrt.f32 %v411_v32  ;;  %v744_v43 = vadd.f32 %v1919_v8, %v743_v15  ;;  %vm1034_vm3 = vweird.f32 %v981_v35  ;;  %vm448_vm7 = vweird.f32 %v411_v32 }
 0x1e3   :  { %vm1039_vm5 = vcmp.eq.f32.partialorder %v1038_v53, 8.507059e+37  ;;  %v1041_v25 = vor.u32 1.1754944e-38, %v1040_v28 }
 0x1e4   :  { %v959_v22 = vadd.f32 %v953_v50, %v744_v43 }
 0x1e6   :  { %v1233_v9 = vpop.eup %1232  ;;  %v1163_v12 = vmul.f32 -1.442695, %v959_v22 }
 0x1e7   :  { %v1235_v40 = vpop.eup %1234  ;;  %v982_v5 = vadd.f32 1.0, %v1233_v9 }
 0x1e8   :  { %v1237_v13 = vpop.eup %1236  ;;  %v1030_v37 = vmul.f32 %v1235_v40, %v981_v35  ;;  %1238 = vpow2.f32 %v1163_v12  ;;  %vm1035_vm1 = vweird.f32 %v1235_v40 }
 0x1e9   :  { %1240 = vrcp.f32 %v982_v5  ;;  %v443_v18 = vmul.f32 %v1237_v13, %v411_v32  ;;  %vm1036_vm4 = vmor %vm1034_vm3, %vm1035_vm1  ;;  %vm449_vm6 = vweird.f32 %v1237_v13  ;;  %v1055_v26 = vand.u32 2147483648, %v982_v5 }
 0x1ea   :  { %v1031_v23 = vsub.f32 1.0, %v1030_v37  ;;  %vm450_vm2 = vmor %vm448_vm7, %vm449_vm6  ;;  %v1053_v54 = vand.u32 2147483647, %v982_v5  ;;  %vm1049_vm9 = vweird.f32 %v982_v5 }
 0x1eb   :  { %v444_v51 = vmul.f32 %v1237_v13, %v443_v18  ;;  %v1056_v15 = vor.u32 1.1754944e-38, %v1055_v26 }
 0x1ec   :  { %v1032_v31 = vmul.f32 %v1235_v40, %v1031_v23  ;;  %vm1054_vm13 = vcmp.eq.f32.partialorder %v1053_v54, 8.507059e+37 }
 0x1ed   :  { %v445_v16 = vmul.f32 0.5, %v444_v51 }
 0x1ee   :  { %v1239_v7 = vpop.eup %1238  ;;  %v1033_v20 = vadd.f32 %v1235_v40, %v1032_v31 }
 0x1ef   :  { %v1241_v17 = vpop.eup %1240  ;;  %v983_v19 = vadd.f32 1.0, %v1239_v7  ;;  %v446_v29 = vsub.f32 1.5, %v445_v16 }
 0x1f0   :  { %v1037_v3 = vsel %vm1036_vm4, %v1235_v40, %v1033_v20  ;;  %v1045_v57 = vmul.f32 %v1241_v17, %v982_v5  ;;  %vm1050_vm8 = vweird.f32 %v1241_v17 }
 0x1f1   :  { %v1042_v61 = vsel %vm1039_vm5, %v1041_v25, %v1037_v3  ;;  %1242 = vrcp.f32 %v983_v19  ;;  %v447_v21 = vmul.f32 %v1237_v13, %v446_v29  ;;  %vm1051_vm10 = vmor %vm1049_vm9, %vm1050_vm8  ;;  %v1070_v22 = vand.u32 2147483648, %v983_v19 }
 0x1f2   :  { %1077 = vst [vmem:[%s2114_s11 + $0x18] sm:$0xff] %v1042_v61  ;;  %v1046_v59 = vsub.f32 1.0, %v1045_v57  ;;  %v1068_v9 = vand.u32 2147483647, %v983_v19  ;;  %vm1064_vm11 = vweird.f32 %v983_v19 }
 0x1f3   :  { %v451_v27 = vsel %vm450_vm2, %v1237_v13, %v447_v21  ;;  %v1071_v40 = vor.u32 1.1754944e-38, %v1070_v22 }
 0x1f4   :  { %v1047_v49 = vmul.f32 %v1241_v17, %v1046_v59  ;;  %v934_v35 = vpop.permute.xlu1 %933  ;;  %v455_v2 = vmul.f32 %v451_v27, %v1642_v56  ;;  %vm1069_vm15 = vcmp.eq.f32.partialorder %v1068_v9, 8.507059e+37 }
 0x1f5   :  { %v950_v8 = vsel %vm923_vm14, %v934_v35, %v919_v6 }
 0x1f6   :  { %v1048_v62 = vadd.f32 %v1241_v17, %v1047_v49  ;;  %v956_v32 = vadd.f32 %v950_v8, %v735_v10  ;;  %473 = vperm.xlu1 %1178, %v455_v2  }
 0x1f7   :  { %v1243_v14 = vpop.eup %1242 }
 0x1f8   :  { %v1052_v58 = vsel %vm1051_vm10, %v1241_v17, %v1048_v62  ;;  %v1060_v44 = vmul.f32 %v1243_v14, %v983_v19  ;;  %v1160_v43 = vmul.f32 -1.442695, %v956_v32  ;;  %vm1065_vm14 = vweird.f32 %v1243_v14 }
 0x1f9   :  { %v1057_v50 = vsel %vm1054_vm13, %v1056_v15, %v1052_v58  ;;  %vm1066_vm12 = vmor %vm1064_vm11, %vm1065_vm14 }
 0x1fa   :  { %1078 = vst [vmem:[%s2114_s11 + $0x20] sm:$0xff] %v1057_v50  ;;  %v1061_v30 = vsub.f32 1.0, %v1060_v44  ;;  %1244 = vpow2.f32 %v1160_v43 }
 0x1fc   :  { %v1062_v56 = vmul.f32 %v1243_v14, %v1061_v30 }
 0x1fe   :  { %v1063_v12 = vadd.f32 %v1243_v14, %v1062_v56 }
 0x200   :  { %v1245_v5 = vpop.eup %1244  ;;  %v1067_v13 = vsel %vm1066_vm12, %v1243_v14, %v1063_v12 }
 0x201   :  { %v1072_v37 = vsel %vm1069_vm15, %v1071_v40, %v1067_v13  ;;  %v980_v23 = vadd.f32 1.0, %v1245_v5 }
 0x202   :  { %1079 = vst [vmem:[%s2114_s11 + $0x28] sm:$0xff] %v1072_v37 }
 0x203   :  { %1246 = vrcp.f32 %v980_v23  ;;  %v1025_v31 = vand.u32 2147483648, %v980_v23  ;;  %v1023_v7 = vand.u32 2147483647, %v980_v23  ;;  %vm1019_vm1 = vweird.f32 %v980_v23 }
 0x205   :  { %v1026_v16 = vor.u32 1.1754944e-38, %v1025_v31  ;;  %vm1024_vm4 = vcmp.eq.f32.partialorder %v1023_v7, 8.507059e+37 }
 0x209   :  { %v1247_v18 = vpop.eup %1246 }
 0x20a   :  { %v1015_v53 = vmul.f32 %v1247_v18, %v980_v23  ;;  %vm1020_vm0 = vweird.f32 %v1247_v18 }
 0x20b   :  { %vm1021_vm3 = vmor %vm1019_vm1, %vm1020_vm0 }
 0x20c   :  { %v1016_v28 = vsub.f32 1.0, %v1015_v53 }
 0x20e   :  { %v1017_v51 = vmul.f32 %v1247_v18, %v1016_v28 }
 0x210   :  { %v1018_v20 = vadd.f32 %v1247_v18, %v1017_v51 }
 0x212   :  { %v1022_v17 = vsel %vm1021_vm3, %v1247_v18, %v1018_v20 }
 0x213   :  { %v1027_v25 = vsel %vm1024_vm4, %v1026_v16, %v1022_v17 }
 0x214   :  { %1076 = vst [vmem:[%s2114_s11 + $0x10] sm:$0xff] %v1027_v25  ;;  %v299_v19 = vpop.permute.xlu2 %298 }
 0x215   :  { %v316_v3 = vmul.f32 %v299_v19, %v1784_v52  ;;  %v317_v57 = vmul.f32 %v299_v19, %v1787_v42 }
 0x217   :  { %v344_v29 = vadd.f32 %v1713_v36, %v316_v3  ;;  %v345_v61 = vadd.f32 %v1713_v36, %v317_v57 }
 0x219   :  { %352 = vst [vmem:[%s2112_s9] sm:$0xff] %v344_v29 }
 0x21a   :  { %353 = vst [vmem:[%s2112_s9 + $0x8] sm:$0xff] %v345_v61 }
 0x21c   :  { %v459_v10 = vpop.permute.xlu2 %458 }
 0x21d   :  { %v476_v59 = vmul.f32 %v459_v10, %v1721_v48  ;;  %v477_v21 = vmul.f32 %v459_v10, %v1724_v55  ;;  %v309_v52 = vpop.permute.xlu1 %308  ;;  %v1249_v48 = vld [vmem:[%s2109_s6] ss:$4 sm:$0x3] }
 0x21e   :  { %v320_v26 = vmul.f32 %v309_v52, %v1756_v41  ;;  %v321_v49 = vmul.f32 %v309_v52, %v1759_v24  ;;  %v517_v55 = vperm.slane %v1249_v48, 0 }
 0x21f   :  { %v484_v42 = vadd.f32 %v476_v59, %v1713_v36  ;;  %v485_v6 = vadd.f32 %v477_v21, %v1713_v36  ;;  %v557_v36 = vpop.f32.mrf.mxu0 }
 0x220   :  { %v348_v54 = vadd.f32 %v1861_v39, %v320_v26  ;;  %v349_v35 = vadd.f32 %v1861_v39, %v321_v49  ;;  %v558_v41 = vadd.f32 %v557_v36, %v517_v55 }
 0x221   :  { %1126 = vst [vmem:[%s2112_s9 + $0x40] sm:$0xff] %v484_v42 }
 0x222   :  { %1127 = vst [vmem:[%s2112_s9 + $0x48] sm:$0xff] %v485_v6 }
 0x223   :  { %356 = vst [vmem:[%s2112_s9 + $0x20] sm:$0xff] %v348_v54 }
 0x224   :  { %357 = vst [vmem:[%s2112_s9 + $0x28] sm:$0xff] %v349_v35  ;;  %v314_v24 = vpop.permute.xlu2 %313 }
 0x225   :  { %v322_v27 = vmul.f32 %v314_v24, %v1774_v33  ;;  %v323_v8 = vmul.f32 %v314_v24, %v1777_v47  ;;  %610 = vst [vmem:[#allocation2] sm:$0xff] %v558_v41 }
 0x227   :  { %v350_v2 = vadd.f32 %v1815_v4, %v322_v27  ;;  %v351_v62 = vadd.f32 %v1815_v4, %v323_v8  ;;  %v560_v32 = vpop.f32.mrf.mxu0 }
 0x228   :  { %v561_v14 = vadd.f32 %v560_v32, %v517_v55 }
 0x229   :  { %358 = vst [vmem:[%s2112_s9 + $0x30] sm:$0xff] %v350_v2 }
 0x22a   :  { %359 = vst [vmem:[%s2112_s9 + $0x38] sm:$0xff] %v351_v62 }
 0x22b   :  { %611 = vst [vmem:[#allocation2 + $0x8] sm:$0xff] %v561_v14 }
 0x22c   :  { %v464_v15 = vpop.permute.xlu2 %463 }
 0x22d   :  { %v478_v33 = vmul.f32 %v464_v15, %v1735_v63  ;;  %v479_v47 = vmul.f32 %v464_v15, %v1738_v0 }
 0x22f   :  { %v486_v58 = vadd.f32 %v478_v33, %v1715_v38  ;;  %v487_v44 = vadd.f32 %v479_v47, %v1715_v38  ;;  %v563_v43 = vpop.f32.mrf.mxu0 }
 0x230   :  { %v564_v50 = vadd.f32 %v563_v43, %v517_v55 }
 0x231   :  { %1128 = vst [vmem:[%s2112_s9 + $0x50] sm:$0xff] %v486_v58 }
 0x232   :  { %1129 = vst [vmem:[%s2112_s9 + $0x58] sm:$0xff] %v487_v44 }
 0x233   :  { %612 = vst [vmem:[#allocation2 + $0x10] sm:$0xff] %v564_v50 }
 0x234   :  { %v304_v30 = vpop.permute.xlu0 %303 }
 0x235   :  { %v318_v63 = vmul.f32 %v304_v30, %v1801_v46  ;;  %v319_v0 = vmul.f32 %v304_v30, %v1804_v60 }
 0x237   :  { %v346_v22 = vadd.f32 %v1715_v38, %v318_v63  ;;  %v347_v56 = vadd.f32 %v1715_v38, %v319_v0  ;;  %v566_v9 = vpop.f32.mrf.mxu0 }
 0x238   :  { %v567_v12 = vadd.f32 %v566_v9, %v517_v55 }
 0x239   :  { %354 = vst [vmem:[%s2112_s9 + $0x10] sm:$0xff] %v346_v22 }
 0x23a   :  { %355 = vst [vmem:[%s2112_s9 + $0x18] sm:$0xff] %v347_v56 }
 0x23b   :  { %613 = vst [vmem:[#allocation2 + $0x18] sm:$0xff] %v567_v12 }
 0x23c   :  { %v469_v40 = vpop.permute.xlu0 %468 }
 0x23d   :  { %v480_v46 = vmul.f32 %v469_v40, %v1766_v45  ;;  %v481_v60 = vmul.f32 %v469_v40, %v1769_v34 }
 0x23f   :  { %v488_v5 = vadd.f32 %v480_v46, %v1861_v39  ;;  %v489_v38 = vadd.f32 %v481_v60, %v1861_v39  ;;  %v569_v13 = vpop.f32.mrf.mxu0 }
 0x240   :  { %v570_v37 = vadd.f32 %v569_v13, %v517_v55 }
 0x241   :  { %1130 = vst [vmem:[%s2112_s9 + $0x60] sm:$0xff] %v488_v5 }
 0x242   :  { %1131 = vst [vmem:[%s2112_s9 + $0x68] sm:$0xff] %v489_v38 }
 0x243   :  { %614 = vst [vmem:[#allocation2 + $0x20] sm:$0xff] %v570_v37 }
 0x247   :  { %v572_v45 = vpop.f32.mrf.mxu0 }
 0x248   :  { %v573_v34 = vadd.f32 %v572_v45, %v517_v55 }
 0x24a   :  { %615 = vst [vmem:[#allocation2 + $0x28] sm:$0xff] %v573_v34 }
 0x24b   :  { %1094 = dma.vmem_to_hbm [thread:$0]  %s1087_s1, 768, %s1089_s22, [#allocation3], %s1280_s23, %s1280_s23, %s1281_s24  }
 0x268   :  { %v474_v39 = vpop.permute.xlu1 %473 }
 0x269   :  { %v482_v23 = vmul.f32 %v474_v39, %v1846_v11  ;;  %v483_v18 = vmul.f32 %v474_v39, %v1849_v1 }
 0x26b   :  { %v490_v53 = vadd.f32 %v482_v23, %v1815_v4  ;;  %v491_v28 = vadd.f32 %v483_v18, %v1815_v4 }
 0x26d   :  { %1132 = vst [vmem:[%s2112_s9 + $0x70] sm:$0xff] %v490_v53 }
 0x26e   :  { %1133 = vst [vmem:[%s2112_s9 + $0x78] sm:$0xff] %v491_v28 }
 0x26f   :  { %1274 = dma.done.wait [#allocation3], 768  }
 0x270   :  { %1275 = vsyncadd [#allocation3], 4294966528 }
 0x271   :  { %1105 = vsyncpa [#allocation3], 1 }

</bundles_post_ra>
